<compile_context>
chip_gen: v7x
topology: tpu7x:2x2x1
jax: 0.10.0
libtpu: 0.0.40
codegen_flags: <defaults>
</compile_context>

<pallas_src>
import functools
import math

import jax
import jax.numpy as jnp
from jax.experimental import pallas as pl
from jax.experimental.pallas import tpu as pltpu

LN_EPS = 1e-5                        # matches torch.nn.LayerNorm default
_VMEM_LIMIT = 48 * 1024 * 1024       # stays under v7x's 64 MiB physical VMEM


def _row_tile(n):
    """Row-tile size for row-parallel kernels: full block at toy sizes,
    256/512/1024-row tiles at realistic sizes (keeps tiles in VMEM and
    restores double-buffered pipelining)."""
    for t in (1024, 512, 256):
        if n > t and n % t == 0:
            return t
    return n


def _cparams(n_axes=1):
    return pltpu.CompilerParams(
        dimension_semantics=("parallel",) * n_axes,
        vmem_limit_bytes=_VMEM_LIMIT)


def _ln(y, g, b):
    mu = jnp.mean(y, axis=-1, keepdims=True)
    var = jnp.mean((y - mu) ** 2, axis=-1, keepdims=True)
    return (y - mu) * jax.lax.rsqrt(var + LN_EPS) * g + b


# -----------------------------------------------------------------------------
# Fused kernel 1: data embedding + Haar wavelet conv (high | low concat)
# -----------------------------------------------------------------------------
def pallas_embed_wavelet(x_even, x_odd, w_emb, w_wave_t0, w_wave_t1):
    """out[t] = emb(x[2t]) @ Wwave_tap0 + emb(x[2t+1]) @ Wwave_tap1
    where emb(x) = x @ w_emb (token conv cols + time features concatenated)."""
    N2, Kin = x_even.shape
    Dm = w_wave_t0.shape[1]
    tn = _row_tile(N2)

    def kern(xe_ref, xo_ref, we_ref, wt0_ref, wt1_ref, o_ref):
        e0 = jnp.dot(xe_ref[...], we_ref[...], preferred_element_type=jnp.float32)
        e1 = jnp.dot(xo_ref[...], we_ref[...], preferred_element_type=jnp.float32)
        o_ref[...] = (jnp.dot(e0, wt0_ref[...], preferred_element_type=jnp.float32)
                      + jnp.dot(e1, wt1_ref[...], preferred_element_type=jnp.float32))

    return pl.pallas_call(
        kern,
        out_shape=jax.ShapeDtypeStruct((N2, Dm), jnp.float32),
        grid=(N2 // tn,),
        in_specs=[
            pl.BlockSpec((tn, Kin), lambda i: (i, 0)),
            pl.BlockSpec((tn, Kin), lambda i: (i, 0)),
            pl.BlockSpec(w_emb.shape, lambda i: (0, 0)),
            pl.BlockSpec(w_wave_t0.shape, lambda i: (0, 0)),
            pl.BlockSpec(w_wave_t1.shape, lambda i: (0, 0)),
        ],
        out_specs=pl.BlockSpec((tn, Dm), lambda i: (i, 0)),
        compiler_params=_cparams(),
    )(x_even, x_odd, w_emb, w_wave_t0, w_wave_t1)


def embed_and_wavelet(emb_p, w_wave, x, x_mark):
    """DataEmbedding_wo_pos + conv_h/conv_l + concat, as one pallas_call.
    (dropout = identity at inference)."""
    B, L, Cin = x.shape
    Dm = emb_p["token_W"].shape[1]
    # circular pad, kernel-3 im2col (glue only; compute stays in the kernel)
    xp = jnp.concatenate([x[:, -1:, :], x, x[:, :1, :]], axis=1)
    cols = jnp.stack([xp[:, i:i + L, :] for i in range(3)], axis=2)     # (B,L,3,Cin)
    xin = jnp.concatenate([cols.reshape(B, L, 3 * Cin), x_mark], axis=-1)
    Kin = xin.shape[-1]
    x_even = xin[:, 0::2, :].reshape(B * (L // 2), Kin)
    x_odd = xin[:, 1::2, :].reshape(B * (L // 2), Kin)
    # single fused embedding weight: [token_W ; time_W]
    w_emb = jnp.concatenate([emb_p["token_W"], emb_p["time_W"]], axis=0)
    out = pallas_embed_wavelet(x_even, x_odd, w_emb, w_wave[:Dm, :], w_wave[Dm:, :])
    return out.reshape(B, L // 2, w_wave.shape[1])


# -----------------------------------------------------------------------------
# Fused kernel 2: multi-head attention + output proj + residual + LayerNorm
# -----------------------------------------------------------------------------
def pallas_mha_ln(x, kv, wq, bq, wk, bk, wv, bv, wo, bo, gamma, beta, n_heads):
    """y = LayerNorm(x + MHA(x, kv, kv) @ Wo + bo).
    Q/K/V projections are single full-width matmuls (lane-dense D outputs);
    heads are then static lane slices. 1/sqrt(dh) is pre-folded into wq/bq."""
    B, Lq, D = x.shape
    Lk = kv.shape[1]
    dh = D // n_heads

    def kern(x_ref, kv_ref, wq_ref, bq_ref, wk_ref, bk_ref, wv_ref, bv_ref,
             wo_ref, bo_ref, g_ref, bb_ref, o_ref):
        xb = x_ref[0]                       # (Lq, D)
        kvb = kv_ref[0]                     # (Lk, D)
        q = jnp.dot(xb, wq_ref[...], preferred_element_type=jnp.float32) + bq_ref[...]
        k = jnp.dot(kvb, wk_ref[...], preferred_element_type=jnp.float32) + bk_ref[...]
        v = jnp.dot(kvb, wv_ref[...], preferred_element_type=jnp.float32) + bv_ref[...]
        wo = wo_ref[...]
        attn_out = jnp.zeros((Lq, D), jnp.float32)
        for h in range(n_heads):            # static unroll; per-head softmax
            sl = slice(h * dh, (h + 1) * dh)
            qh, kh, vh = q[:, sl], k[:, sl], v[:, sl]
            # q @ k^T without materializing a transpose of K
            s = jax.lax.dot_general(qh, kh, (((1,), (1,)), ((), ())),
                                    preferred_element_type=jnp.float32)
            s = s - jnp.max(s, axis=-1, keepdims=True)
            p = jnp.exp(s)
            p = p / jnp.sum(p, axis=-1, keepdims=True)
            oh = jnp.dot(p, vh, preferred_element_type=jnp.float32)
            # output projection rows for this head -> full-width accumulate
            attn_out = attn_out + jnp.dot(oh, wo[sl, :],
                                          preferred_element_type=jnp.float32)
        y = xb + attn_out + bo_ref[...]
        o_ref[0] = _ln(y, g_ref[...], bb_ref[...])

    full2 = lambda shp: pl.BlockSpec(shp, lambda i: (0, 0))
    return pl.pallas_call(
        kern,
        out_shape=jax.ShapeDtypeStruct((B, Lq, D), jnp.float32),
        grid=(B,),
        in_specs=[
            pl.BlockSpec((1, Lq, D), lambda i: (i, 0, 0)),
            pl.BlockSpec((1, Lk, D), lambda i: (i, 0, 0)),
            full2((D, D)), full2((1, D)),
            full2((D, D)), full2((1, D)),
            full2((D, D)), full2((1, D)),
            full2((D, D)), full2((1, D)),
            full2((1, D)), full2((1, D)),
        ],
        out_specs=pl.BlockSpec((1, Lq, D), lambda i: (i, 0, 0)),
        compiler_params=_cparams(),
    )(x, kv, wq, bq, wk, bk, wv, bv, wo, bo, gamma, beta)


def attention_block(p, ln_g, ln_b, q_in, kv_in, n_heads):
    """MyAttentionLayer + residual + LayerNorm, one pallas_call."""
    D = q_in.shape[-1]
    dh = D // n_heads
    scale = 1.0 / math.sqrt(dh)
    r = lambda b: b.reshape(1, D)
    return pallas_mha_ln(
        q_in, kv_in,
        p["Wq"] * scale, r(p["bq"] * scale),
        p["Wk"], r(p["bk"]),
        p["Wv"], r(p["bv"]),
        p["Wo"], r(p["bo"]),
        ln_g.reshape(1, D), ln_b.reshape(1, D), n_heads)


# -----------------------------------------------------------------------------
# Fused kernel 3: FFN (W1 -> GELU -> W2) + residual + LayerNorm
#                 (+ optional fused stack-final LayerNorm for the last layer)
# -----------------------------------------------------------------------------
def pallas_ffn_ln(x, w1, b1, w2, b2, gamma, beta, final_g=None, final_b=None):
    B, L, D = x.shape
    N = B * L
    dff = w1.shape[1]
    x2 = x.reshape(N, D)
    tn = _row_tile(N)
    fuse_final = final_g is not None

    def kern(x_ref, w1_ref, b1_ref, w2_ref, b2_ref, g_ref, bb_ref, *rest):
        if fuse_final:
            fg_ref, fb_ref, o_ref = rest
        else:
            (o_ref,) = rest
        xv = x_ref[...]
        h = jnp.dot(xv, w1_ref[...], preferred_element_type=jnp.float32) + b1_ref[...]
        h = jax.nn.gelu(h)   # TODO(synk): torch F.gelu is erf-exact; tanh approx used
        y = jnp.dot(h, w2_ref[...], preferred_element_type=jnp.float32) + b2_ref[...]
        y = _ln(xv + y, g_ref[...], bb_ref[...])
        if fuse_final:       # Encoder/Decoder norm_layer fused into last layer
            y = _ln(y, fg_ref[...], fb_ref[...])
        o_ref[...] = y

    in_specs = [
        pl.BlockSpec((tn, D), lambda i: (i, 0)),
        pl.BlockSpec((D, dff), lambda i: (0, 0)),
        pl.BlockSpec((1, dff), lambda i: (0, 0)),
        pl.BlockSpec((dff, D), lambda i: (0, 0)),
        pl.BlockSpec((1, D), lambda i: (0, 0)),
        pl.BlockSpec((1, D), lambda i: (0, 0)),
        pl.BlockSpec((1, D), lambda i: (0, 0)),
    ]
    args = [x2, w1, b1.reshape(1, dff), w2, b2.reshape(1, D),
            gamma.reshape(1, D), beta.reshape(1, D)]
    if fuse_final:
        in_specs += [pl.BlockSpec((1, D), lambda i: (0, 0))] * 2
        args += [final_g.reshape(1, D), final_b.reshape(1, D)]

    out = pl.pallas_call(
        kern,
        out_shape=jax.ShapeDtypeStruct((N, D), jnp.float32),
        grid=(N // tn,),
        in_specs=in_specs,
        out_specs=pl.BlockSpec((tn, D), lambda i: (i, 0)),
        compiler_params=_cparams(),
    )(*args)
    return out.reshape(B, L, D)


# -----------------------------------------------------------------------------
# Fused kernel 4: inverse wavelet (transposed conv, sum of h/l) + projection
# -----------------------------------------------------------------------------
def pallas_iwavelet_project(x, w_i0, w_i1, w_proj, b_proj):
    """tap0 = x @ w_i0 @ Wp + bp ; tap1 = x @ w_i1 @ Wp + bp ; interleave in time."""
    B, L, D = x.shape
    N = B * L
    Dm, c_out = w_proj.shape
    x2 = x.reshape(N, D)
    tn = _row_tile(N)

    def kern(x_ref, w0_ref, w1_ref, wp_ref, bp_ref, o0_ref, o1_ref):
        xv = x_ref[...]
        y0 = jnp.dot(xv, w0_ref[...], preferred_element_type=jnp.float32)
        y1 = jnp.dot(xv, w1_ref[...], preferred_element_type=jnp.float32)
        o0_ref[...] = jnp.dot(y0, wp_ref[...], preferred_element_type=jnp.float32) + bp_ref[...]
        o1_ref[...] = jnp.dot(y1, wp_ref[...], preferred_element_type=jnp.float32) + bp_ref[...]

    o0, o1 = pl.pallas_call(
        kern,
        out_shape=(jax.ShapeDtypeStruct((N, c_out), jnp.float32),
                   jax.ShapeDtypeStruct((N, c_out), jnp.float32)),
        grid=(N // tn,),
        in_specs=[
            pl.BlockSpec((tn, D), lambda i: (i, 0)),
            pl.BlockSpec((D, Dm), lambda i: (0, 0)),
            pl.BlockSpec((D, Dm), lambda i: (0, 0)),
            pl.BlockSpec((Dm, c_out), lambda i: (0, 0)),
            pl.BlockSpec((1, c_out), lambda i: (0, 0)),
        ],
        out_specs=(pl.BlockSpec((tn, c_out), lambda i: (i, 0)),
                   pl.BlockSpec((tn, c_out), lambda i: (i, 0))),
        compiler_params=_cparams(),
    )(x2, w_i0, w_i1, w_proj, b_proj.reshape(1, c_out))
    y = jnp.stack([o0.reshape(B, L, c_out), o1.reshape(B, L, c_out)], axis=2)
    return y.reshape(B, 2 * L, c_out)


# -----------------------------------------------------------------------------
# Model layers
# -----------------------------------------------------------------------------
def encoder_layer(p, x, n_heads, final_g=None, final_b=None):
    x = attention_block(p["attn"], p["ln1_g"], p["ln1_b"], x, x, n_heads)
    return pallas_ffn_ln(x, p["W1"], p["b1"], p["W2"], p["b2"],
                         p["ln2_g"], p["ln2_b"], final_g, final_b)


def decoder_layer(p, x, cross, n_heads, final_g=None, final_b=None):
    x = attention_block(p["self_attn"], p["ln1_g"], p["ln1_b"], x, x, n_heads)
    x = attention_block(p["cross_attn"], p["ln2_g"], p["ln2_b"], x, cross, n_heads)
    return pallas_ffn_ln(x, p["W1"], p["b1"], p["W2"], p["b2"],
                         p["ln3_g"], p["ln3_b"], final_g, final_b)


def model_forward(params, x_enc, x_mark_enc, x_dec, x_mark_dec, *, n_heads, pred_len):
    d_model = params["proj_W"].shape[0]
    # wavelet conv weight: [conv_h | conv_l] -> output is already the h/l concat
    w_wave = jnp.concatenate([params["conv_h_W"], params["conv_l_W"]], axis=1)

    # ---- encoder path ----
    enc_out = embed_and_wavelet(params["enc_emb"], w_wave, x_enc, x_mark_enc)
    enc_layers = params["encoder"]["layers"]
    for i, lp in enumerate(enc_layers):
        last = i == len(enc_layers) - 1
        enc_out = encoder_layer(
            lp, enc_out, n_heads,
            final_g=params["encoder"]["norm_g"] if last else None,
            final_b=params["encoder"]["norm_b"] if last else None)

    # ---- decoder path ----
    dec_out = embed_and_wavelet(params["dec_emb"], w_wave, x_dec, x_mark_dec)
    dec_layers = params["decoder"]["layers"]
    for i, lp in enumerate(dec_layers):
        last = i == len(dec_layers) - 1
        dec_out = decoder_layer(
            lp, dec_out, enc_out, n_heads,
            final_g=params["decoder"]["norm_g"] if last else None,
            final_b=params["decoder"]["norm_b"] if last else None)

    # ---- inverse wavelet + projection ----
    # rows = [iconv_h ; iconv_l] matches the dec_out = [h | l] channel split
    w_iconv = jnp.concatenate([params["iconv_h_W"], params["iconv_l_W"]], axis=0)
    out = pallas_iwavelet_project(dec_out, w_iconv[:, :d_model], w_iconv[:, d_model:],
                                  params["proj_W"], params["proj_b"])
    return out[:, -pred_len:, :]


# -----------------------------------------------------------------------------
# Deterministic parameter initialization
# -----------------------------------------------------------------------------
class KeyGen:
    def __init__(self, key):
        self.key = key

    def __call__(self):
        self.key, sub = jax.random.split(self.key)
        return sub


def _lin(kg, fin, fout, bias=True):
    W = jax.random.normal(kg(), (fin, fout), jnp.float32) * (1.0 / math.sqrt(fin))
    b = jnp.zeros((fout,), jnp.float32) if bias else None
    return W, b


def _attn_params(kg, D):
    p = {}
    for name in ("q", "k", "v", "o"):
        W, b = _lin(kg, D, D)
        p["W" + name] = W
        p["b" + name] = b
    return p


def _layer_params(kg, D, d_ff, cross=False):
    p = {"attn" if not cross else "self_attn": _attn_params(kg, D)}
    if cross:
        p["cross_attn"] = _attn_params(kg, D)
    p["W1"], p["b1"] = _lin(kg, D, d_ff)
    p["W2"], p["b2"] = _lin(kg, d_ff, D)
    for nm in (("ln1", "ln2", "ln3") if cross else ("ln1", "ln2")):
        p[nm + "_g"] = jnp.ones((D,), jnp.float32)
        p[nm + "_b"] = jnp.zeros((D,), jnp.float32)
    return p


def init_params(key, *, enc_in, dec_in, c_out, d_model, d_ff, n_mark,
                e_layers, d_layers):
    kg = KeyGen(key)
    sqrt2 = 1.0 / math.sqrt(2.0)
    haar_lo = jnp.array([sqrt2, sqrt2], jnp.float32)
    haar_hi = jnp.array([sqrt2, -sqrt2], jnp.float32)
    Dh = d_model // 2

    def wconv_w(filt, Cin, Cout):
        proj = jax.random.normal(kg(), (Cin, Cout), jnp.float32) / math.sqrt(Cin)
        return (filt[:, None, None] * proj[None, :, :]).reshape(2 * Cin, Cout)

    def wtconv_w(filt, Cin, Cout):
        proj = jax.random.normal(kg(), (Cin, Cout), jnp.float32) / math.sqrt(Cin)
        return (filt[None, :, None] * proj[:, None, :]).reshape(Cin, 2 * Cout)

    params = {
        "enc_emb": {
            "token_W": _lin(kg, 3 * enc_in, d_model, bias=False)[0],
            "time_W": _lin(kg, n_mark, d_model, bias=False)[0],
        },
        "dec_emb": {
            "token_W": _lin(kg, 3 * dec_in, d_model, bias=False)[0],
            "time_W": _lin(kg, n_mark, d_model, bias=False)[0],
        },
        "conv_h_W": wconv_w(haar_hi, d_model, Dh),
        "conv_l_W": wconv_w(haar_lo, d_model, Dh),
        "iconv_h_W": wtconv_w(haar_hi, Dh, d_model),
        "iconv_l_W": wtconv_w(haar_lo, Dh, d_model),
        "encoder": {
            "layers": [_layer_params(kg, d_model, d_ff, cross=False) for _ in range(e_layers)],
            "norm_g": jnp.ones((d_model,), jnp.float32),
            "norm_b": jnp.zeros((d_model,), jnp.float32),
        },
        "decoder": {
            "layers": [_layer_params(kg, d_model, d_ff, cross=True) for _ in range(d_layers)],
            "norm_g": jnp.ones((d_model,), jnp.float32),
            "norm_b": jnp.zeros((d_model,), jnp.float32),
        },
    }
    params["proj_W"], params["proj_b"] = _lin(kg, d_model, c_out)
    return params


# -----------------------------------------------------------------------------
# Main
# -----------------------------------------------------------------------------
if __name__ == "__main__":
    # small config (mirrors configs.*)
    B = 2
    enc_in = dec_in = c_out = 4
    d_model, n_heads, d_ff = 32, 4, 64
    seq_len, label_len, pred_len = 16, 8, 8
    n_mark = 4
    e_layers = d_layers = 1

    key = jax.random.PRNGKey(0)
    k_par, k_xe, k_me, k_xd, k_md = jax.random.split(key, 5)

    params = init_params(
        k_par, enc_in=enc_in, dec_in=dec_in, c_out=c_out, d_model=d_model,
        d_ff=d_ff, n_mark=n_mark, e_layers=e_layers, d_layers=d_layers)

    x_enc = jax.random.normal(k_xe, (B, seq_len, enc_in), jnp.float32)
    x_mark_enc = jax.random.normal(k_me, (B, seq_len, n_mark), jnp.float32)
    x_dec = jax.random.normal(k_xd, (B, label_len + pred_len, dec_in), jnp.float32)
    x_mark_dec = jax.random.normal(k_md, (B, label_len + pred_len, n_mark), jnp.float32)

    fwd = jax.jit(functools.partial(model_forward, n_heads=n_heads, pred_len=pred_len))
    out = fwd(params, x_enc, x_mark_enc, x_dec, x_mark_dec)
    out = jax.block_until_ready(out)

    assert out.shape == (B, pred_len, c_out), out.shape
    assert bool(jnp.all(jnp.isfinite(out)))
    print("KERNEL_OK")
</pallas_src>

<mosaic_0001>
module attributes {stable_mosaic.version = 11 : i64} {
  func.func @kern(%arg0: i32, %arg1: memref<16x16xf32, #tpu.memory_space<vmem>>, %arg2: memref<16x16xf32, #tpu.memory_space<vmem>>, %arg3: memref<16x32xf32, #tpu.memory_space<vmem>>, %arg4: memref<32x32xf32, #tpu.memory_space<vmem>>, %arg5: memref<32x32xf32, #tpu.memory_space<vmem>>, %arg6: memref<16x32xf32, #tpu.memory_space<vmem>>) attributes {dimension_semantics = [#tpu.dimension_semantics<parallel>], iteration_bounds = array<i64: 1>, scalar_prefetch = 0 : i64, scratch_operands = 0 : i64, tpu.core_type = #tpu.core_type<tc>, window_params = [{transform_indices = @transform_0, window_bounds = array<i64: 16, 16>}, {transform_indices = @transform_1, window_bounds = array<i64: 16, 16>}, {pipeline_mode = #tpu.pipeline_mode<synchronous>, transform_indices = @transform_2, window_bounds = array<i64: 16, 32>}, {pipeline_mode = #tpu.pipeline_mode<synchronous>, transform_indices = @transform_3, window_bounds = array<i64: 32, 32>}, {pipeline_mode = #tpu.pipeline_mode<synchronous>, transform_indices = @transform_4, window_bounds = array<i64: 32, 32>}, {transform_indices = @transform_5, window_bounds = array<i64: 16, 32>}]} {
    %c0 = arith.constant 0 : index
    %c0_0 = arith.constant 0 : index
    %0 = vector.load %arg1[%c0, %c0_0] : memref<16x16xf32, #tpu.memory_space<vmem>>, vector<16x16xf32>
    %c0_1 = arith.constant 0 : index
    %c0_2 = arith.constant 0 : index
    %1 = vector.load %arg3[%c0_1, %c0_2] : memref<16x32xf32, #tpu.memory_space<vmem>>, vector<16x32xf32>
    %cst = arith.constant dense<0.000000e+00> : vector<16x32xf32>
    %2 = tpu.matmul %0, %1, %cst {dimension_numbers = #tpu.dot_dimension_numbers<[1], [0], [0], [1], [0, 0, 1, 1], [], []>} : vector<16x16xf32>, vector<16x32xf32>, vector<16x32xf32> -> vector<16x32xf32>
    %c0_3 = arith.constant 0 : index
    %c0_4 = arith.constant 0 : index
    %3 = vector.load %arg2[%c0_3, %c0_4] : memref<16x16xf32, #tpu.memory_space<vmem>>, vector<16x16xf32>
    %c0_5 = arith.constant 0 : index
    %c0_6 = arith.constant 0 : index
    %4 = vector.load %arg3[%c0_5, %c0_6] : memref<16x32xf32, #tpu.memory_space<vmem>>, vector<16x32xf32>
    %cst_7 = arith.constant dense<0.000000e+00> : vector<16x32xf32>
    %5 = tpu.matmul %3, %4, %cst_7 {dimension_numbers = #tpu.dot_dimension_numbers<[1], [0], [0], [1], [0, 0, 1, 1], [], []>} : vector<16x16xf32>, vector<16x32xf32>, vector<16x32xf32> -> vector<16x32xf32>
    %c0_8 = arith.constant 0 : index
    %c0_9 = arith.constant 0 : index
    %6 = vector.load %arg4[%c0_8, %c0_9] : memref<32x32xf32, #tpu.memory_space<vmem>>, vector<32x32xf32>
    %cst_10 = arith.constant dense<0.000000e+00> : vector<16x32xf32>
    %7 = tpu.matmul %2, %6, %cst_10 {dimension_numbers = #tpu.dot_dimension_numbers<[1], [0], [0], [1], [0, 0, 1, 1], [], []>} : vector<16x32xf32>, vector<32x32xf32>, vector<16x32xf32> -> vector<16x32xf32>
    %c0_11 = arith.constant 0 : index
    %c0_12 = arith.constant 0 : index
    %8 = vector.load %arg5[%c0_11, %c0_12] : memref<32x32xf32, #tpu.memory_space<vmem>>, vector<32x32xf32>
    %cst_13 = arith.constant dense<0.000000e+00> : vector<16x32xf32>
    %9 = tpu.matmul %5, %8, %cst_13 {dimension_numbers = #tpu.dot_dimension_numbers<[1], [0], [0], [1], [0, 0, 1, 1], [], []>} : vector<16x32xf32>, vector<32x32xf32>, vector<16x32xf32> -> vector<16x32xf32>
    %10 = arith.addf %7, %9 : vector<16x32xf32>
    %c0_14 = arith.constant 0 : index
    %c0_15 = arith.constant 0 : index
    %11 = vector.load %arg6[%c0_14, %c0_15] : memref<16x32xf32, #tpu.memory_space<vmem>>, vector<16x32xf32>
    tpu.vector_store %arg6[%c0_14, %c0_15], %10 {strides = array<i32>} : memref<16x32xf32, #tpu.memory_space<vmem>>, vector<16x32xf32>,
    return
  }
  func.func @transform_0(%arg0: i32) -> (i32, i32) {
    %c0_i32 = arith.constant 0 : i32
    %c0_i32_0 = arith.constant 0 : i32
    return %arg0, %c0_i32 : i32, i32
  }
  func.func @transform_1(%arg0: i32) -> (i32, i32) {
    %c0_i32 = arith.constant 0 : i32
    %c0_i32_0 = arith.constant 0 : i32
    return %arg0, %c0_i32 : i32, i32
  }
  func.func @transform_2(%arg0: i32) -> (i32, i32) {
    %c0_i32 = arith.constant 0 : i32
    %c0_i32_0 = arith.constant 0 : i32
    %c0_i32_1 = arith.constant 0 : i32
    return %c0_i32, %c0_i32_0 : i32, i32
  }
  func.func @transform_3(%arg0: i32) -> (i32, i32) {
    %c0_i32 = arith.constant 0 : i32
    %c0_i32_0 = arith.constant 0 : i32
    %c0_i32_1 = arith.constant 0 : i32
    return %c0_i32, %c0_i32_0 : i32, i32
  }
  func.func @transform_4(%arg0: i32) -> (i32, i32) {
    %c0_i32 = arith.constant 0 : i32
    %c0_i32_0 = arith.constant 0 : i32
    %c0_i32_1 = arith.constant 0 : i32
    return %c0_i32, %c0_i32_0 : i32, i32
  }
  func.func @transform_5(%arg0: i32) -> (i32, i32) {
    %c0_i32 = arith.constant 0 : i32
    %c0_i32_0 = arith.constant 0 : i32
    return %arg0, %c0_i32 : i32, i32
  }
}

module attributes {stable_mosaic.version = 11 : i64} {
  func.func @kern(%arg0: i32, %arg1: memref<16x32xf32, #tpu.memory_space<vmem>>, %arg2: memref<32x64xf32, #tpu.memory_space<vmem>>, %arg3: memref<1x64xf32, #tpu.memory_space<vmem>>, %arg4: memref<64x32xf32, #tpu.memory_space<vmem>>, %arg5: memref<1x32xf32, #tpu.memory_space<vmem>>, %arg6: memref<1x32xf32, #tpu.memory_space<vmem>>, %arg7: memref<1x32xf32, #tpu.memory_space<vmem>>, %arg8: memref<1x32xf32, #tpu.memory_space<vmem>>, %arg9: memref<1x32xf32, #tpu.memory_space<vmem>>, %arg10: memref<16x32xf32, #tpu.memory_space<vmem>>) attributes {dimension_semantics = [#tpu.dimension_semantics<parallel>], iteration_bounds = array<i64: 1>, scalar_prefetch = 0 : i64, scratch_operands = 0 : i64, tpu.core_type = #tpu.core_type<tc>, window_params = [{transform_indices = @transform_0, window_bounds = array<i64: 16, 32>}, {pipeline_mode = #tpu.pipeline_mode<synchronous>, transform_indices = @transform_1, window_bounds = array<i64: 32, 64>}, {pipeline_mode = #tpu.pipeline_mode<synchronous>, transform_indices = @transform_2, window_bounds = array<i64: 1, 64>}, {pipeline_mode = #tpu.pipeline_mode<synchronous>, transform_indices = @transform_3, window_bounds = array<i64: 64, 32>}, {pipeline_mode = #tpu.pipeline_mode<synchronous>, transform_indices = @transform_4, window_bounds = array<i64: 1, 32>}, {pipeline_mode = #tpu.pipeline_mode<synchronous>, transform_indices = @transform_5, window_bounds = array<i64: 1, 32>}, {pipeline_mode = #tpu.pipeline_mode<synchronous>, transform_indices = @transform_6, window_bounds = array<i64: 1, 32>}, {pipeline_mode = #tpu.pipeline_mode<synchronous>, transform_indices = @transform_7, window_bounds = array<i64: 1, 32>}, {pipeline_mode = #tpu.pipeline_mode<synchronous>, transform_indices = @transform_8, window_bounds = array<i64: 1, 32>}, {transform_indices = @transform_9, window_bounds = array<i64: 16, 32>}]} {
    %c0 = arith.constant 0 : index
    %c0_0 = arith.constant 0 : index
    %0 = vector.load %arg1[%c0, %c0_0] : memref<16x32xf32, #tpu.memory_space<vmem>>, vector<16x32xf32>
    %c0_1 = arith.constant 0 : index
    %c0_2 = arith.constant 0 : index
    %1 = vector.load %arg2[%c0_1, %c0_2] : memref<32x64xf32, #tpu.memory_space<vmem>>, vector<32x64xf32>
    %cst = arith.constant dense<0.000000e+00> : vector<16x64xf32>
    %2 = tpu.matmul %0, %1, %cst {dimension_numbers = #tpu.dot_dimension_numbers<[1], [0], [0], [1], [0, 0, 1, 1], [], []>} : vector<16x32xf32>, vector<32x64xf32>, vector<16x64xf32> -> vector<16x64xf32>
    %c0_3 = arith.constant 0 : index
    %c0_4 = arith.constant 0 : index
    %3 = vector.load %arg3[%c0_3, %c0_4] : memref<1x64xf32, #tpu.memory_space<vmem>>, vector<1x64xf32>
    %4 = vector.broadcast %3 : vector<1x64xf32> to vector<16x64xf32>
    %5 = arith.addf %2, %4 : vector<16x64xf32>
    %6 = arith.mulf %5, %5 : vector<16x64xf32>
    %7 = arith.mulf %5, %6 : vector<16x64xf32>
    %cst_5 = arith.constant 4.471500e-02 : f32
    %8 = vector.broadcast %cst_5 : f32 to vector<16x64xf32>
    %9 = arith.mulf %8, %7 : vector<16x64xf32>
    %10 = arith.addf %5, %9 : vector<16x64xf32>
    %cst_6 = arith.constant 0.797884583 : f32
    %11 = vector.broadcast %cst_6 : f32 to vector<16x64xf32>
    %12 = arith.mulf %11, %10 : vector<16x64xf32>
    %13 = math.tanh %12 : vector<16x64xf32>
    %cst_7 = arith.constant 1.000000e+00 : f32
    %14 = vector.broadcast %cst_7 : f32 to vector<16x64xf32>
    %15 = arith.addf %14, %13 : vector<16x64xf32>
    %cst_8 = arith.constant 5.000000e-01 : f32
    %16 = vector.broadcast %cst_8 : f32 to vector<16x64xf32>
    %17 = arith.mulf %16, %15 : vector<16x64xf32>
    %18 = arith.mulf %5, %17 : vector<16x64xf32>
    %c0_9 = arith.constant 0 : index
    %c0_10 = arith.constant 0 : index
    %19 = vector.load %arg4[%c0_9, %c0_10] : memref<64x32xf32, #tpu.memory_space<vmem>>, vector<64x32xf32>
    %cst_11 = arith.constant dense<0.000000e+00> : vector<16x32xf32>
    %20 = tpu.matmul %18, %19, %cst_11 {dimension_numbers = #tpu.dot_dimension_numbers<[1], [0], [0], [1], [0, 0, 1, 1], [], []>} : vector<16x64xf32>, vector<64x32xf32>, vector<16x32xf32> -> vector<16x32xf32>
    %c0_12 = arith.constant 0 : index
    %c0_13 = arith.constant 0 : index
    %21 = vector.load %arg5[%c0_12, %c0_13] : memref<1x32xf32, #tpu.memory_space<vmem>>, vector<1x32xf32>
    %22 = vector.broadcast %21 : vector<1x32xf32> to vector<16x32xf32>
    %23 = arith.addf %20, %22 : vector<16x32xf32>
    %24 = arith.addf %0, %23 : vector<16x32xf32>
    %c0_14 = arith.constant 0 : index
    %c0_15 = arith.constant 0 : index
    %25 = vector.load %arg6[%c0_14, %c0_15] : memref<1x32xf32, #tpu.memory_space<vmem>>, vector<1x32xf32>
    %c0_16 = arith.constant 0 : index
    %c0_17 = arith.constant 0 : index
    %26 = vector.load %arg7[%c0_16, %c0_17] : memref<1x32xf32, #tpu.memory_space<vmem>>, vector<1x32xf32>
    %cst_18 = arith.constant dense<0.000000e+00> : vector<16xf32>
    %27 = vector.multi_reduction <add>, %24, %cst_18 [1] : vector<16x32xf32> to vector<16xf32>
    %28 = vector.shape_cast %27 : vector<16xf32> to vector<16x1xf32>
    %cst_19 = arith.constant 3.200000e+01 : f32
    %29 = vector.broadcast %cst_19 : f32 to vector<16x1xf32>
    %30 = arith.divf %28, %29 : vector<16x1xf32>
    %31 = vector.broadcast %30 : vector<16x1xf32> to vector<16x32xf32>
    %32 = arith.subf %24, %31 : vector<16x32xf32>
    %33 = arith.mulf %32, %32 : vector<16x32xf32>
    %cst_20 = arith.constant dense<0.000000e+00> : vector<16xf32>
    %34 = vector.multi_reduction <add>, %33, %cst_20 [1] : vector<16x32xf32> to vector<16xf32>
    %35 = vector.shape_cast %34 : vector<16xf32> to vector<16x1xf32>
    %cst_21 = arith.constant 3.200000e+01 : f32
    %36 = vector.broadcast %cst_21 : f32 to vector<16x1xf32>
    %37 = arith.divf %35, %36 : vector<16x1xf32>
    %38 = vector.broadcast %30 : vector<16x1xf32> to vector<16x32xf32>
    %39 = arith.subf %24, %38 : vector<16x32xf32>
    %cst_22 = arith.constant 9.99999974E-6 : f32
    %40 = vector.broadcast %cst_22 : f32 to vector<16x1xf32>
    %41 = arith.addf %37, %40 : vector<16x1xf32>
    %42 = math.rsqrt %41 : vector<16x1xf32>
    %43 = vector.broadcast %42 : vector<16x1xf32> to vector<16x32xf32>
    %44 = arith.mulf %39, %43 : vector<16x32xf32>
    %45 = vector.broadcast %25 : vector<1x32xf32> to vector<16x32xf32>
    %46 = arith.mulf %44, %45 : vector<16x32xf32>
    %47 = vector.broadcast %26 : vector<1x32xf32> to vector<16x32xf32>
    %48 = arith.addf %46, %47 : vector<16x32xf32>
    %c0_23 = arith.constant 0 : index
    %c0_24 = arith.constant 0 : index
    %49 = vector.load %arg8[%c0_23, %c0_24] : memref<1x32xf32, #tpu.memory_space<vmem>>, vector<1x32xf32>
    %c0_25 = arith.constant 0 : index
    %c0_26 = arith.constant 0 : index
    %50 = vector.load %arg9[%c0_25, %c0_26] : memref<1x32xf32, #tpu.memory_space<vmem>>, vector<1x32xf32>
    %cst_27 = arith.constant dense<0.000000e+00> : vector<16xf32>
    %51 = vector.multi_reduction <add>, %48, %cst_27 [1] : vector<16x32xf32> to vector<16xf32>
    %52 = vector.shape_cast %51 : vector<16xf32> to vector<16x1xf32>
    %cst_28 = arith.constant 3.200000e+01 : f32
    %53 = vector.broadcast %cst_28 : f32 to vector<16x1xf32>
    %54 = arith.divf %52, %53 : vector<16x1xf32>
    %55 = vector.broadcast %54 : vector<16x1xf32> to vector<16x32xf32>
    %56 = arith.subf %48, %55 : vector<16x32xf32>
    %57 = arith.mulf %56, %56 : vector<16x32xf32>
    %cst_29 = arith.constant dense<0.000000e+00> : vector<16xf32>
    %58 = vector.multi_reduction <add>, %57, %cst_29 [1] : vector<16x32xf32> to vector<16xf32>
    %59 = vector.shape_cast %58 : vector<16xf32> to vector<16x1xf32>
    %cst_30 = arith.constant 3.200000e+01 : f32
    %60 = vector.broadcast %cst_30 : f32 to vector<16x1xf32>
    %61 = arith.divf %59, %60 : vector<16x1xf32>
    %62 = vector.broadcast %54 : vector<16x1xf32> to vector<16x32xf32>
    %63 = arith.subf %48, %62 : vector<16x32xf32>
    %cst_31 = arith.constant 9.99999974E-6 : f32
    %64 = vector.broadcast %cst_31 : f32 to vector<16x1xf32>
    %65 = arith.addf %61, %64 : vector<16x1xf32>
    %66 = math.rsqrt %65 : vector<16x1xf32>
    %67 = vector.broadcast %66 : vector<16x1xf32> to vector<16x32xf32>
    %68 = arith.mulf %63, %67 : vector<16x32xf32>
    %69 = vector.broadcast %49 : vector<1x32xf32> to vector<16x32xf32>
    %70 = arith.mulf %68, %69 : vector<16x32xf32>
    %71 = vector.broadcast %50 : vector<1x32xf32> to vector<16x32xf32>
    %72 = arith.addf %70, %71 : vector<16x32xf32>
    %c0_32 = arith.constant 0 : index
    %c0_33 = arith.constant 0 : index
    %73 = vector.load %arg10[%c0_32, %c0_33] : memref<16x32xf32, #tpu.memory_space<vmem>>, vector<16x32xf32>
    tpu.vector_store %arg10[%c0_32, %c0_33], %72 {strides = array<i32>} : memref<16x32xf32, #tpu.memory_space<vmem>>, vector<16x32xf32>,
    return
  }
  func.func @transform_0(%arg0: i32) -> (i32, i32) {
    %c0_i32 = arith.constant 0 : i32
    %c0_i32_0 = arith.constant 0 : i32
    return %arg0, %c0_i32 : i32, i32
  }
  func.func @transform_1(%arg0: i32) -> (i32, i32) {
    %c0_i32 = arith.constant 0 : i32
    %c0_i32_0 = arith.constant 0 : i32
    %c0_i32_1 = arith.constant 0 : i32
    return %c0_i32, %c0_i32_0 : i32, i32
  }
  func.func @transform_2(%arg0: i32) -> (i32, i32) {
    %c0_i32 = arith.constant 0 : i32
    %c0_i32_0 = arith.constant 0 : i32
    %c0_i32_1 = arith.constant 0 : i32
    return %c0_i32, %c0_i32_0 : i32, i32
  }
  func.func @transform_3(%arg0: i32) -> (i32, i32) {
    %c0_i32 = arith.constant 0 : i32
    %c0_i32_0 = arith.constant 0 : i32
    %c0_i32_1 = arith.constant 0 : i32
    return %c0_i32, %c0_i32_0 : i32, i32
  }
  func.func @transform_4(%arg0: i32) -> (i32, i32) {
    %c0_i32 = arith.constant 0 : i32
    %c0_i32_0 = arith.constant 0 : i32
    %c0_i32_1 = arith.constant 0 : i32
    return %c0_i32, %c0_i32_0 : i32, i32
  }
  func.func @transform_5(%arg0: i32) -> (i32, i32) {
    %c0_i32 = arith.constant 0 : i32
    %c0_i32_0 = arith.constant 0 : i32
    %c0_i32_1 = arith.constant 0 : i32
    return %c0_i32, %c0_i32_0 : i32, i32
  }
  func.func @transform_6(%arg0: i32) -> (i32, i32) {
    %c0_i32 = arith.constant 0 : i32
    %c0_i32_0 = arith.constant 0 : i32
    %c0_i32_1 = arith.constant 0 : i32
    return %c0_i32, %c0_i32_0 : i32, i32
  }
  func.func @transform_7(%arg0: i32) -> (i32, i32) {
    %c0_i32 = arith.constant 0 : i32
    %c0_i32_0 = arith.constant 0 : i32
    %c0_i32_1 = arith.constant 0 : i32
    return %c0_i32, %c0_i32_0 : i32, i32
  }
  func.func @transform_8(%arg0: i32) -> (i32, i32) {
    %c0_i32 = arith.constant 0 : i32
    %c0_i32_0 = arith.constant 0 : i32
    %c0_i32_1 = arith.constant 0 : i32
    return %c0_i32, %c0_i32_0 : i32, i32
  }
  func.func @transform_9(%arg0: i32) -> (i32, i32) {
    %c0_i32 = arith.constant 0 : i32
    %c0_i32_0 = arith.constant 0 : i32
    return %arg0, %c0_i32 : i32, i32
  }
}

module attributes {stable_mosaic.version = 11 : i64} {
  func.func @kern(%arg0: i32, %arg1: memref<1x8x32xf32, #tpu.memory_space<vmem>>, %arg2: memref<1x8x32xf32, #tpu.memory_space<vmem>>, %arg3: memref<32x32xf32, #tpu.memory_space<vmem>>, %arg4: memref<1x32xf32, #tpu.memory_space<vmem>>, %arg5: memref<32x32xf32, #tpu.memory_space<vmem>>, %arg6: memref<1x32xf32, #tpu.memory_space<vmem>>, %arg7: memref<32x32xf32, #tpu.memory_space<vmem>>, %arg8: memref<1x32xf32, #tpu.memory_space<vmem>>, %arg9: memref<32x32xf32, #tpu.memory_space<vmem>>, %arg10: memref<1x32xf32, #tpu.memory_space<vmem>>, %arg11: memref<1x32xf32, #tpu.memory_space<vmem>>, %arg12: memref<1x32xf32, #tpu.memory_space<vmem>>, %arg13: memref<1x8x32xf32, #tpu.memory_space<vmem>>) attributes {dimension_semantics = [#tpu.dimension_semantics<parallel>], iteration_bounds = array<i64: 2>, scalar_prefetch = 0 : i64, scratch_operands = 0 : i64, tpu.core_type = #tpu.core_type<tc>, window_params = [{transform_indices = @transform_0, window_bounds = array<i64: 1, 8, 32>}, {transform_indices = @transform_1, window_bounds = array<i64: 1, 8, 32>}, {pipeline_mode = #tpu.pipeline_mode<synchronous>, transform_indices = @transform_2, window_bounds = array<i64: 32, 32>}, {pipeline_mode = #tpu.pipeline_mode<synchronous>, transform_indices = @transform_3, window_bounds = array<i64: 1, 32>}, {pipeline_mode = #tpu.pipeline_mode<synchronous>, transform_indices = @transform_4, window_bounds = array<i64: 32, 32>}, {pipeline_mode = #tpu.pipeline_mode<synchronous>, transform_indices = @transform_5, window_bounds = array<i64: 1, 32>}, {pipeline_mode = #tpu.pipeline_mode<synchronous>, transform_indices = @transform_6, window_bounds = array<i64: 32, 32>}, {pipeline_mode = #tpu.pipeline_mode<synchronous>, transform_indices = @transform_7, window_bounds = array<i64: 1, 32>}, {pipeline_mode = #tpu.pipeline_mode<synchronous>, transform_indices = @transform_8, window_bounds = array<i64: 32, 32>}, {pipeline_mode = #tpu.pipeline_mode<synchronous>, transform_indices = @transform_9, window_bounds = array<i64: 1, 32>}, {pipeline_mode = #tpu.pipeline_mode<synchronous>, transform_indices = @transform_10, window_bounds = array<i64: 1, 32>}, {pipeline_mode = #tpu.pipeline_mode<synchronous>, transform_indices = @transform_11, window_bounds = array<i64: 1, 32>}, {transform_indices = @transform_12, window_bounds = array<i64: 1, 8, 32>}]} {
    %c0 = arith.constant 0 : index
    %c0_0 = arith.constant 0 : index
    %c0_1 = arith.constant 0 : index
    %0 = vector.load %arg1[%c0, %c0_0, %c0_1] : memref<1x8x32xf32, #tpu.memory_space<vmem>>, vector<1x8x32xf32>
    %1 = vector.shape_cast %0 : vector<1x8x32xf32> to vector<8x32xf32>
    %c0_2 = arith.constant 0 : index
    %c0_3 = arith.constant 0 : index
    %c0_4 = arith.constant 0 : index
    %2 = vector.load %arg2[%c0_2, %c0_3, %c0_4] : memref<1x8x32xf32, #tpu.memory_space<vmem>>, vector<1x8x32xf32>
    %3 = vector.shape_cast %2 : vector<1x8x32xf32> to vector<8x32xf32>
    %c0_5 = arith.constant 0 : index
    %c0_6 = arith.constant 0 : index
    %4 = vector.load %arg3[%c0_5, %c0_6] : memref<32x32xf32, #tpu.memory_space<vmem>>, vector<32x32xf32>
    %cst = arith.constant dense<0.000000e+00> : vector<8x32xf32>
    %5 = tpu.matmul %1, %4, %cst {dimension_numbers = #tpu.dot_dimension_numbers<[1], [0], [0], [1], [0, 0, 1, 1], [], []>} : vector<8x32xf32>, vector<32x32xf32>, vector<8x32xf32> -> vector<8x32xf32>
    %c0_7 = arith.constant 0 : index
    %c0_8 = arith.constant 0 : index
    %6 = vector.load %arg4[%c0_7, %c0_8] : memref<1x32xf32, #tpu.memory_space<vmem>>, vector<1x32xf32>
    %7 = vector.broadcast %6 : vector<1x32xf32> to vector<8x32xf32>
    %8 = arith.addf %5, %7 : vector<8x32xf32>
    %c0_9 = arith.constant 0 : index
    %c0_10 = arith.constant 0 : index
    %9 = vector.load %arg5[%c0_9, %c0_10] : memref<32x32xf32, #tpu.memory_space<vmem>>, vector<32x32xf32>
    %cst_11 = arith.constant dense<0.000000e+00> : vector<8x32xf32>
    %10 = tpu.matmul %3, %9, %cst_11 {dimension_numbers = #tpu.dot_dimension_numbers<[1], [0], [0], [1], [0, 0, 1, 1], [], []>} : vector<8x32xf32>, vector<32x32xf32>, vector<8x32xf32> -> vector<8x32xf32>
    %c0_12 = arith.constant 0 : index
    %c0_13 = arith.constant 0 : index
    %11 = vector.load %arg6[%c0_12, %c0_13] : memref<1x32xf32, #tpu.memory_space<vmem>>, vector<1x32xf32>
    %12 = vector.broadcast %11 : vector<1x32xf32> to vector<8x32xf32>
    %13 = arith.addf %10, %12 : vector<8x32xf32>
    %c0_14 = arith.constant 0 : index
    %c0_15 = arith.constant 0 : index
    %14 = vector.load %arg7[%c0_14, %c0_15] : memref<32x32xf32, #tpu.memory_space<vmem>>, vector<32x32xf32>
    %cst_16 = arith.constant dense<0.000000e+00> : vector<8x32xf32>
    %15 = tpu.matmul %3, %14, %cst_16 {dimension_numbers = #tpu.dot_dimension_numbers<[1], [0], [0], [1], [0, 0, 1, 1], [], []>} : vector<8x32xf32>, vector<32x32xf32>, vector<8x32xf32> -> vector<8x32xf32>
    %c0_17 = arith.constant 0 : index
    %c0_18 = arith.constant 0 : index
    %16 = vector.load %arg8[%c0_17, %c0_18] : memref<1x32xf32, #tpu.memory_space<vmem>>, vector<1x32xf32>
    %17 = vector.broadcast %16 : vector<1x32xf32> to vector<8x32xf32>
    %18 = arith.addf %15, %17 : vector<8x32xf32>
    %c0_19 = arith.constant 0 : index
    %c0_20 = arith.constant 0 : index
    %19 = vector.load %arg9[%c0_19, %c0_20] : memref<32x32xf32, #tpu.memory_space<vmem>>, vector<32x32xf32>
    %cst_21 = arith.constant 0.000000e+00 : f32
    %20 = vector.broadcast %cst_21 : f32 to vector<8x32xf32>
    %21 = vector.extract_strided_slice %8 {offsets = [0, 0], sizes = [8, 8], strides = [1, 1]} : vector<8x32xf32> to vector<8x8xf32>
    %22 = vector.extract_strided_slice %13 {offsets = [0, 0], sizes = [8, 8], strides = [1, 1]} : vector<8x32xf32> to vector<8x8xf32>
    %23 = vector.extract_strided_slice %18 {offsets = [0, 0], sizes = [8, 8], strides = [1, 1]} : vector<8x32xf32> to vector<8x8xf32>
    %cst_22 = arith.constant dense<0.000000e+00> : vector<8x8xf32>
    %24 = tpu.matmul %21, %22, %cst_22 {dimension_numbers = #tpu.dot_dimension_numbers<[1], [1], [0], [0], [0, 0, 1, 0], [], []>} : vector<8x8xf32>, vector<8x8xf32>, vector<8x8xf32> -> vector<8x8xf32>
    %cst_23 = arith.constant dense<0xFF800000> : vector<8xf32>
    %25 = vector.multi_reduction <maximumf>, %24, %cst_23 [1] : vector<8x8xf32> to vector<8xf32>
    %26 = vector.shape_cast %25 : vector<8xf32> to vector<8x1xf32>
    %27 = vector.broadcast %26 : vector<8x1xf32> to vector<8x8xf32>
    %28 = arith.subf %24, %27 : vector<8x8xf32>
    %29 = math.exp %28 : vector<8x8xf32>
    %cst_24 = arith.constant dense<0.000000e+00> : vector<8xf32>
    %30 = vector.multi_reduction <add>, %29, %cst_24 [1] : vector<8x8xf32> to vector<8xf32>
    %31 = vector.shape_cast %30 : vector<8xf32> to vector<8x1xf32>
    %32 = vector.broadcast %31 : vector<8x1xf32> to vector<8x8xf32>
    %33 = arith.divf %29, %32 : vector<8x8xf32>
    %cst_25 = arith.constant dense<0.000000e+00> : vector<8x8xf32>
    %34 = tpu.matmul %33, %23, %cst_25 {dimension_numbers = #tpu.dot_dimension_numbers<[1], [0], [0], [1], [0, 0, 1, 1], [], []>} : vector<8x8xf32>, vector<8x8xf32>, vector<8x8xf32> -> vector<8x8xf32>
    %35 = vector.extract_strided_slice %19 {offsets = [0, 0], sizes = [8, 32], strides = [1, 1]} : vector<32x32xf32> to vector<8x32xf32>
    %cst_26 = arith.constant dense<0.000000e+00> : vector<8x32xf32>
    %36 = tpu.matmul %34, %35, %cst_26 {dimension_numbers = #tpu.dot_dimension_numbers<[1], [0], [0], [1], [0, 0, 1, 1], [], []>} : vector<8x8xf32>, vector<8x32xf32>, vector<8x32xf32> -> vector<8x32xf32>
    %37 = arith.addf %20, %36 : vector<8x32xf32>
    %38 = vector.extract_strided_slice %8 {offsets = [0, 8], sizes = [8, 8], strides = [1, 1]} : vector<8x32xf32> to vector<8x8xf32>
    %39 = vector.extract_strided_slice %13 {offsets = [0, 8], sizes = [8, 8], strides = [1, 1]} : vector<8x32xf32> to vector<8x8xf32>
    %40 = vector.extract_strided_slice %18 {offsets = [0, 8], sizes = [8, 8], strides = [1, 1]} : vector<8x32xf32> to vector<8x8xf32>
    %cst_27 = arith.constant dense<0.000000e+00> : vector<8x8xf32>
    %41 = tpu.matmul %38, %39, %cst_27 {dimension_numbers = #tpu.dot_dimension_numbers<[1], [1], [0], [0], [0, 0, 1, 0], [], []>} : vector<8x8xf32>, vector<8x8xf32>, vector<8x8xf32> -> vector<8x8xf32>
    %cst_28 = arith.constant dense<0xFF800000> : vector<8xf32>
    %42 = vector.multi_reduction <maximumf>, %41, %cst_28 [1] : vector<8x8xf32> to vector<8xf32>
    %43 = vector.shape_cast %42 : vector<8xf32> to vector<8x1xf32>
    %44 = vector.broadcast %43 : vector<8x1xf32> to vector<8x8xf32>
    %45 = arith.subf %41, %44 : vector<8x8xf32>
    %46 = math.exp %45 : vector<8x8xf32>
    %cst_29 = arith.constant dense<0.000000e+00> : vector<8xf32>
    %47 = vector.multi_reduction <add>, %46, %cst_29 [1] : vector<8x8xf32> to vector<8xf32>
    %48 = vector.shape_cast %47 : vector<8xf32> to vector<8x1xf32>
    %49 = vector.broadcast %48 : vector<8x1xf32> to vector<8x8xf32>
    %50 = arith.divf %46, %49 : vector<8x8xf32>
    %cst_30 = arith.constant dense<0.000000e+00> : vector<8x8xf32>
    %51 = tpu.matmul %50, %40, %cst_30 {dimension_numbers = #tpu.dot_dimension_numbers<[1], [0], [0], [1], [0, 0, 1, 1], [], []>} : vector<8x8xf32>, vector<8x8xf32>, vector<8x8xf32> -> vector<8x8xf32>
    %52 = vector.extract_strided_slice %19 {offsets = [8, 0], sizes = [8, 32], strides = [1, 1]} : vector<32x32xf32> to vector<8x32xf32>
    %cst_31 = arith.constant dense<0.000000e+00> : vector<8x32xf32>
    %53 = tpu.matmul %51, %52, %cst_31 {dimension_numbers = #tpu.dot_dimension_numbers<[1], [0], [0], [1], [0, 0, 1, 1], [], []>} : vector<8x8xf32>, vector<8x32xf32>, vector<8x32xf32> -> vector<8x32xf32>
    %54 = arith.addf %37, %53 : vector<8x32xf32>
    %55 = vector.extract_strided_slice %8 {offsets = [0, 16], sizes = [8, 8], strides = [1, 1]} : vector<8x32xf32> to vector<8x8xf32>
    %56 = vector.extract_strided_slice %13 {offsets = [0, 16], sizes = [8, 8], strides = [1, 1]} : vector<8x32xf32> to vector<8x8xf32>
    %57 = vector.extract_strided_slice %18 {offsets = [0, 16], sizes = [8, 8], strides = [1, 1]} : vector<8x32xf32> to vector<8x8xf32>
    %cst_32 = arith.constant dense<0.000000e+00> : vector<8x8xf32>
    %58 = tpu.matmul %55, %56, %cst_32 {dimension_numbers = #tpu.dot_dimension_numbers<[1], [1], [0], [0], [0, 0, 1, 0], [], []>} : vector<8x8xf32>, vector<8x8xf32>, vector<8x8xf32> -> vector<8x8xf32>
    %cst_33 = arith.constant dense<0xFF800000> : vector<8xf32>
    %59 = vector.multi_reduction <maximumf>, %58, %cst_33 [1] : vector<8x8xf32> to vector<8xf32>
    %60 = vector.shape_cast %59 : vector<8xf32> to vector<8x1xf32>
    %61 = vector.broadcast %60 : vector<8x1xf32> to vector<8x8xf32>
    %62 = arith.subf %58, %61 : vector<8x8xf32>
    %63 = math.exp %62 : vector<8x8xf32>
    %cst_34 = arith.constant dense<0.000000e+00> : vector<8xf32>
    %64 = vector.multi_reduction <add>, %63, %cst_34 [1] : vector<8x8xf32> to vector<8xf32>
    %65 = vector.shape_cast %64 : vector<8xf32> to vector<8x1xf32>
    %66 = vector.broadcast %65 : vector<8x1xf32> to vector<8x8xf32>
    %67 = arith.divf %63, %66 : vector<8x8xf32>
    %cst_35 = arith.constant dense<0.000000e+00> : vector<8x8xf32>
    %68 = tpu.matmul %67, %57, %cst_35 {dimension_numbers = #tpu.dot_dimension_numbers<[1], [0], [0], [1], [0, 0, 1, 1], [], []>} : vector<8x8xf32>, vector<8x8xf32>, vector<8x8xf32> -> vector<8x8xf32>
    %69 = vector.extract_strided_slice %19 {offsets = [16, 0], sizes = [8, 32], strides = [1, 1]} : vector<32x32xf32> to vector<8x32xf32>
    %cst_36 = arith.constant dense<0.000000e+00> : vector<8x32xf32>
    %70 = tpu.matmul %68, %69, %cst_36 {dimension_numbers = #tpu.dot_dimension_numbers<[1], [0], [0], [1], [0, 0, 1, 1], [], []>} : vector<8x8xf32>, vector<8x32xf32>, vector<8x32xf32> -> vector<8x32xf32>
    %71 = arith.addf %54, %70 : vector<8x32xf32>
    %72 = vector.extract_strided_slice %8 {offsets = [0, 24], sizes = [8, 8], strides = [1, 1]} : vector<8x32xf32> to vector<8x8xf32>
    %73 = vector.extract_strided_slice %13 {offsets = [0, 24], sizes = [8, 8], strides = [1, 1]} : vector<8x32xf32> to vector<8x8xf32>
    %74 = vector.extract_strided_slice %18 {offsets = [0, 24], sizes = [8, 8], strides = [1, 1]} : vector<8x32xf32> to vector<8x8xf32>
    %cst_37 = arith.constant dense<0.000000e+00> : vector<8x8xf32>
    %75 = tpu.matmul %72, %73, %cst_37 {dimension_numbers = #tpu.dot_dimension_numbers<[1], [1], [0], [0], [0, 0, 1, 0], [], []>} : vector<8x8xf32>, vector<8x8xf32>, vector<8x8xf32> -> vector<8x8xf32>
    %cst_38 = arith.constant dense<0xFF800000> : vector<8xf32>
    %76 = vector.multi_reduction <maximumf>, %75, %cst_38 [1] : vector<8x8xf32> to vector<8xf32>
    %77 = vector.shape_cast %76 : vector<8xf32> to vector<8x1xf32>
    %78 = vector.broadcast %77 : vector<8x1xf32> to vector<8x8xf32>
    %79 = arith.subf %75, %78 : vector<8x8xf32>
    %80 = math.exp %79 : vector<8x8xf32>
    %cst_39 = arith.constant dense<0.000000e+00> : vector<8xf32>
    %81 = vector.multi_reduction <add>, %80, %cst_39 [1] : vector<8x8xf32> to vector<8xf32>
    %82 = vector.shape_cast %81 : vector<8xf32> to vector<8x1xf32>
    %83 = vector.broadcast %82 : vector<8x1xf32> to vector<8x8xf32>
    %84 = arith.divf %80, %83 : vector<8x8xf32>
    %cst_40 = arith.constant dense<0.000000e+00> : vector<8x8xf32>
    %85 = tpu.matmul %84, %74, %cst_40 {dimension_numbers = #tpu.dot_dimension_numbers<[1], [0], [0], [1], [0, 0, 1, 1], [], []>} : vector<8x8xf32>, vector<8x8xf32>, vector<8x8xf32> -> vector<8x8xf32>
    %86 = vector.extract_strided_slice %19 {offsets = [24, 0], sizes = [8, 32], strides = [1, 1]} : vector<32x32xf32> to vector<8x32xf32>
    %cst_41 = arith.constant dense<0.000000e+00> : vector<8x32xf32>
    %87 = tpu.matmul %85, %86, %cst_41 {dimension_numbers = #tpu.dot_dimension_numbers<[1], [0], [0], [1], [0, 0, 1, 1], [], []>} : vector<8x8xf32>, vector<8x32xf32>, vector<8x32xf32> -> vector<8x32xf32>
    %88 = arith.addf %71, %87 : vector<8x32xf32>
    %89 = arith.addf %1, %88 : vector<8x32xf32>
    %c0_42 = arith.constant 0 : index
    %c0_43 = arith.constant 0 : index
    %90 = vector.load %arg10[%c0_42, %c0_43] : memref<1x32xf32, #tpu.memory_space<vmem>>, vector<1x32xf32>
    %91 = vector.broadcast %90 : vector<1x32xf32> to vector<8x32xf32>
    %92 = arith.addf %89, %91 : vector<8x32xf32>
    %c0_44 = arith.constant 0 : index
    %c0_45 = arith.constant 0 : index
    %93 = vector.load %arg11[%c0_44, %c0_45] : memref<1x32xf32, #tpu.memory_space<vmem>>, vector<1x32xf32>
    %c0_46 = arith.constant 0 : index
    %c0_47 = arith.constant 0 : index
    %94 = vector.load %arg12[%c0_46, %c0_47] : memref<1x32xf32, #tpu.memory_space<vmem>>, vector<1x32xf32>
    %cst_48 = arith.constant dense<0.000000e+00> : vector<8xf32>
    %95 = vector.multi_reduction <add>, %92, %cst_48 [1] : vector<8x32xf32> to vector<8xf32>
    %96 = vector.shape_cast %95 : vector<8xf32> to vector<8x1xf32>
    %cst_49 = arith.constant 3.200000e+01 : f32
    %97 = vector.broadcast %cst_49 : f32 to vector<8x1xf32>
    %98 = arith.divf %96, %97 : vector<8x1xf32>
    %99 = vector.broadcast %98 : vector<8x1xf32> to vector<8x32xf32>
    %100 = arith.subf %92, %99 : vector<8x32xf32>
    %101 = arith.mulf %100, %100 : vector<8x32xf32>
    %cst_50 = arith.constant dense<0.000000e+00> : vector<8xf32>
    %102 = vector.multi_reduction <add>, %101, %cst_50 [1] : vector<8x32xf32> to vector<8xf32>
    %103 = vector.shape_cast %102 : vector<8xf32> to vector<8x1xf32>
    %cst_51 = arith.constant 3.200000e+01 : f32
    %104 = vector.broadcast %cst_51 : f32 to vector<8x1xf32>
    %105 = arith.divf %103, %104 : vector<8x1xf32>
    %106 = vector.broadcast %98 : vector<8x1xf32> to vector<8x32xf32>
    %107 = arith.subf %92, %106 : vector<8x32xf32>
    %cst_52 = arith.constant 9.99999974E-6 : f32
    %108 = vector.broadcast %cst_52 : f32 to vector<8x1xf32>
    %109 = arith.addf %105, %108 : vector<8x1xf32>
    %110 = math.rsqrt %109 : vector<8x1xf32>
    %111 = vector.broadcast %110 : vector<8x1xf32> to vector<8x32xf32>
    %112 = arith.mulf %107, %111 : vector<8x32xf32>
    %113 = vector.broadcast %93 : vector<1x32xf32> to vector<8x32xf32>
    %114 = arith.mulf %112, %113 : vector<8x32xf32>
    %115 = vector.broadcast %94 : vector<1x32xf32> to vector<8x32xf32>
    %116 = arith.addf %114, %115 : vector<8x32xf32>
    %c0_53 = arith.constant 0 : index
    %c0_54 = arith.constant 0 : index
    %c0_55 = arith.constant 0 : index
    %117 = vector.load %arg13[%c0_53, %c0_54, %c0_55] : memref<1x8x32xf32, #tpu.memory_space<vmem>>, vector<1x8x32xf32>
    %118 = vector.shape_cast %117 : vector<1x8x32xf32> to vector<8x32xf32>
    %119 = vector.shape_cast %116 : vector<8x32xf32> to vector<1x8x32xf32>
    tpu.vector_store %arg13[%c0_53, %c0_54, %c0_55], %119 {strides = array<i32>} : memref<1x8x32xf32, #tpu.memory_space<vmem>>, vector<1x8x32xf32>,
    return
  }
  func.func @transform_0(%arg0: i32) -> (i32, i32, i32) {
    %c0_i32 = arith.constant 0 : i32
    %c0_i32_0 = arith.constant 0 : i32
    %c0_i32_1 = arith.constant 0 : i32
    return %arg0, %c0_i32, %c0_i32_0 : i32, i32, i32
  }
  func.func @transform_1(%arg0: i32) -> (i32, i32, i32) {
    %c0_i32 = arith.constant 0 : i32
    %c0_i32_0 = arith.constant 0 : i32
    %c0_i32_1 = arith.constant 0 : i32
    return %arg0, %c0_i32, %c0_i32_0 : i32, i32, i32
  }
  func.func @transform_2(%arg0: i32) -> (i32, i32) {
    %c0_i32 = arith.constant 0 : i32
    %c0_i32_0 = arith.constant 0 : i32
    %c0_i32_1 = arith.constant 0 : i32
    return %c0_i32, %c0_i32_0 : i32, i32
  }
  func.func @transform_3(%arg0: i32) -> (i32, i32) {
    %c0_i32 = arith.constant 0 : i32
    %c0_i32_0 = arith.constant 0 : i32
    %c0_i32_1 = arith.constant 0 : i32
    return %c0_i32, %c0_i32_0 : i32, i32
  }
  func.func @transform_4(%arg0: i32) -> (i32, i32) {
    %c0_i32 = arith.constant 0 : i32
    %c0_i32_0 = arith.constant 0 : i32
    %c0_i32_1 = arith.constant 0 : i32
    return %c0_i32, %c0_i32_0 : i32, i32
  }
  func.func @transform_5(%arg0: i32) -> (i32, i32) {
    %c0_i32 = arith.constant 0 : i32
    %c0_i32_0 = arith.constant 0 : i32
    %c0_i32_1 = arith.constant 0 : i32
    return %c0_i32, %c0_i32_0 : i32, i32
  }
  func.func @transform_6(%arg0: i32) -> (i32, i32) {
    %c0_i32 = arith.constant 0 : i32
    %c0_i32_0 = arith.constant 0 : i32
    %c0_i32_1 = arith.constant 0 : i32
    return %c0_i32, %c0_i32_0 : i32, i32
  }
  func.func @transform_7(%arg0: i32) -> (i32, i32) {
    %c0_i32 = arith.constant 0 : i32
    %c0_i32_0 = arith.constant 0 : i32
    %c0_i32_1 = arith.constant 0 : i32
    return %c0_i32, %c0_i32_0 : i32, i32
  }
  func.func @transform_8(%arg0: i32) -> (i32, i32) {
    %c0_i32 = arith.constant 0 : i32
    %c0_i32_0 = arith.constant 0 : i32
    %c0_i32_1 = arith.constant 0 : i32
    return %c0_i32, %c0_i32_0 : i32, i32
  }
  func.func @transform_9(%arg0: i32) -> (i32, i32) {
    %c0_i32 = arith.constant 0 : i32
    %c0_i32_0 = arith.constant 0 : i32
    %c0_i32_1 = arith.constant 0 : i32
    return %c0_i32, %c0_i32_0 : i32, i32
  }
  func.func @transform_10(%arg0: i32) -> (i32, i32) {
    %c0_i32 = arith.constant 0 : i32
    %c0_i32_0 = arith.constant 0 : i32
    %c0_i32_1 = arith.constant 0 : i32
    return %c0_i32, %c0_i32_0 : i32, i32
  }
  func.func @transform_11(%arg0: i32) -> (i32, i32) {
    %c0_i32 = arith.constant 0 : i32
    %c0_i32_0 = arith.constant 0 : i32
    %c0_i32_1 = arith.constant 0 : i32
    return %c0_i32, %c0_i32_0 : i32, i32
  }
  func.func @transform_12(%arg0: i32) -> (i32, i32, i32) {
    %c0_i32 = arith.constant 0 : i32
    %c0_i32_0 = arith.constant 0 : i32
    %c0_i32_1 = arith.constant 0 : i32
    return %arg0, %c0_i32, %c0_i32_0 : i32, i32, i32
  }
}

module attributes {stable_mosaic.version = 11 : i64} {
  func.func @kern(%arg0: i32, %arg1: memref<16x32xf32, #tpu.memory_space<vmem>>, %arg2: memref<32x32xf32, #tpu.memory_space<vmem>>, %arg3: memref<32x32xf32, #tpu.memory_space<vmem>>, %arg4: memref<32x4xf32, #tpu.memory_space<vmem>>, %arg5: memref<1x4xf32, #tpu.memory_space<vmem>>, %arg6: memref<16x4xf32, #tpu.memory_space<vmem>>, %arg7: memref<16x4xf32, #tpu.memory_space<vmem>>) attributes {dimension_semantics = [#tpu.dimension_semantics<parallel>], iteration_bounds = array<i64: 1>, scalar_prefetch = 0 : i64, scratch_operands = 0 : i64, tpu.core_type = #tpu.core_type<tc>, window_params = [{transform_indices = @transform_0, window_bounds = array<i64: 16, 32>}, {pipeline_mode = #tpu.pipeline_mode<synchronous>, transform_indices = @transform_1, window_bounds = array<i64: 32, 32>}, {pipeline_mode = #tpu.pipeline_mode<synchronous>, transform_indices = @transform_2, window_bounds = array<i64: 32, 32>}, {pipeline_mode = #tpu.pipeline_mode<synchronous>, transform_indices = @transform_3, window_bounds = array<i64: 32, 4>}, {pipeline_mode = #tpu.pipeline_mode<synchronous>, transform_indices = @transform_4, window_bounds = array<i64: 1, 4>}, {transform_indices = @transform_5, window_bounds = array<i64: 16, 4>}, {transform_indices = @transform_6, window_bounds = array<i64: 16, 4>}]} {
    %c0 = arith.constant 0 : index
    %c0_0 = arith.constant 0 : index
    %0 = vector.load %arg1[%c0, %c0_0] : memref<16x32xf32, #tpu.memory_space<vmem>>, vector<16x32xf32>
    %c0_1 = arith.constant 0 : index
    %c0_2 = arith.constant 0 : index
    %1 = vector.load %arg2[%c0_1, %c0_2] : memref<32x32xf32, #tpu.memory_space<vmem>>, vector<32x32xf32>
    %cst = arith.constant dense<0.000000e+00> : vector<16x32xf32>
    %2 = tpu.matmul %0, %1, %cst {dimension_numbers = #tpu.dot_dimension_numbers<[1], [0], [0], [1], [0, 0, 1, 1], [], []>} : vector<16x32xf32>, vector<32x32xf32>, vector<16x32xf32> -> vector<16x32xf32>
    %c0_3 = arith.constant 0 : index
    %c0_4 = arith.constant 0 : index
    %3 = vector.load %arg3[%c0_3, %c0_4] : memref<32x32xf32, #tpu.memory_space<vmem>>, vector<32x32xf32>
    %cst_5 = arith.constant dense<0.000000e+00> : vector<16x32xf32>
    %4 = tpu.matmul %0, %3, %cst_5 {dimension_numbers = #tpu.dot_dimension_numbers<[1], [0], [0], [1], [0, 0, 1, 1], [], []>} : vector<16x32xf32>, vector<32x32xf32>, vector<16x32xf32> -> vector<16x32xf32>
    %c0_6 = arith.constant 0 : index
    %c0_7 = arith.constant 0 : index
    %5 = vector.load %arg4[%c0_6, %c0_7] : memref<32x4xf32, #tpu.memory_space<vmem>>, vector<32x4xf32>
    %cst_8 = arith.constant dense<0.000000e+00> : vector<16x4xf32>
    %6 = tpu.matmul %2, %5, %cst_8 {dimension_numbers = #tpu.dot_dimension_numbers<[1], [0], [0], [1], [0, 0, 1, 1], [], []>} : vector<16x32xf32>, vector<32x4xf32>, vector<16x4xf32> -> vector<16x4xf32>
    %c0_9 = arith.constant 0 : index
    %c0_10 = arith.constant 0 : index
    %7 = vector.load %arg5[%c0_9, %c0_10] : memref<1x4xf32, #tpu.memory_space<vmem>>, vector<1x4xf32>
    %8 = vector.broadcast %7 : vector<1x4xf32> to vector<16x4xf32>
    %9 = arith.addf %6, %8 : vector<16x4xf32>
    %c0_11 = arith.constant 0 : index
    %c0_12 = arith.constant 0 : index
    %10 = vector.load %arg6[%c0_11, %c0_12] : memref<16x4xf32, #tpu.memory_space<vmem>>, vector<16x4xf32>
    tpu.vector_store %arg6[%c0_11, %c0_12], %9 {strides = array<i32>} : memref<16x4xf32, #tpu.memory_space<vmem>>, vector<16x4xf32>,
    %c0_13 = arith.constant 0 : index
    %c0_14 = arith.constant 0 : index
    %11 = vector.load %arg4[%c0_13, %c0_14] : memref<32x4xf32, #tpu.memory_space<vmem>>, vector<32x4xf32>
    %cst_15 = arith.constant dense<0.000000e+00> : vector<16x4xf32>
    %12 = tpu.matmul %4, %11, %cst_15 {dimension_numbers = #tpu.dot_dimension_numbers<[1], [0], [0], [1], [0, 0, 1, 1], [], []>} : vector<16x32xf32>, vector<32x4xf32>, vector<16x4xf32> -> vector<16x4xf32>
    %c0_16 = arith.constant 0 : index
    %c0_17 = arith.constant 0 : index
    %13 = vector.load %arg5[%c0_16, %c0_17] : memref<1x4xf32, #tpu.memory_space<vmem>>, vector<1x4xf32>
    %14 = vector.broadcast %13 : vector<1x4xf32> to vector<16x4xf32>
    %15 = arith.addf %12, %14 : vector<16x4xf32>
    %c0_18 = arith.constant 0 : index
    %c0_19 = arith.constant 0 : index
    %16 = vector.load %arg7[%c0_18, %c0_19] : memref<16x4xf32, #tpu.memory_space<vmem>>, vector<16x4xf32>
    tpu.vector_store %arg7[%c0_18, %c0_19], %15 {strides = array<i32>} : memref<16x4xf32, #tpu.memory_space<vmem>>, vector<16x4xf32>,
    return
  }
  func.func @transform_0(%arg0: i32) -> (i32, i32) {
    %c0_i32 = arith.constant 0 : i32
    %c0_i32_0 = arith.constant 0 : i32
    return %arg0, %c0_i32 : i32, i32
  }
  func.func @transform_1(%arg0: i32) -> (i32, i32) {
    %c0_i32 = arith.constant 0 : i32
    %c0_i32_0 = arith.constant 0 : i32
    %c0_i32_1 = arith.constant 0 : i32
    return %c0_i32, %c0_i32_0 : i32, i32
  }
  func.func @transform_2(%arg0: i32) -> (i32, i32) {
    %c0_i32 = arith.constant 0 : i32
    %c0_i32_0 = arith.constant 0 : i32
    %c0_i32_1 = arith.constant 0 : i32
    return %c0_i32, %c0_i32_0 : i32, i32
  }
  func.func @transform_3(%arg0: i32) -> (i32, i32) {
    %c0_i32 = arith.constant 0 : i32
    %c0_i32_0 = arith.constant 0 : i32
    %c0_i32_1 = arith.constant 0 : i32
    return %c0_i32, %c0_i32_0 : i32, i32
  }
  func.func @transform_4(%arg0: i32) -> (i32, i32) {
    %c0_i32 = arith.constant 0 : i32
    %c0_i32_0 = arith.constant 0 : i32
    %c0_i32_1 = arith.constant 0 : i32
    return %c0_i32, %c0_i32_0 : i32, i32
  }
  func.func @transform_5(%arg0: i32) -> (i32, i32) {
    %c0_i32 = arith.constant 0 : i32
    %c0_i32_0 = arith.constant 0 : i32
    return %arg0, %c0_i32 : i32, i32
  }
  func.func @transform_6(%arg0: i32) -> (i32, i32) {
    %c0_i32 = arith.constant 0 : i32
    %c0_i32_0 = arith.constant 0 : i32
    return %arg0, %c0_i32 : i32, i32
  }
}

</mosaic_0001>

<bundles_post_ra>
// kernel: model_forward.8
= control target key start
LH: loop header
LB: loop body
LE: loop exit
PB: predicated region body
PF: predicated region fallthrough
CT: control target
= control target key end

     0   :  { %vm24_vm0 = vcmask 130048   ;;  %vm197_vm1 = vcmask 261120   ;;  %s544_s2 = inlined_call_operand.vmem [shape: f32[16,32], index: 2, kind: input, shape index: {}]   ;;  %s545_s0 = inlined_call_operand.vmem [shape: f32[16,16], index: 0, kind: input, shape index: {}]   ;;  %s546_s1 = inlined_call_operand.vmem [shape: f32[16,16], index: 1, kind: input, shape index: {}]   ;;  %s547_s4 = inlined_call_operand.vmem [shape: f32[32,32], index: 4, kind: input, shape index: {}]   ;;  %s548_s3 = inlined_call_operand.vmem [shape: f32[32,32], index: 3, kind: input, shape index: {}]   ;;  %s549_s5 = inlined_call_operand.vmem [shape: f32[16,32], index: 5, kind: output, shape index: {}]  }
   0x1   :  { %v22_v0 = vld [vmem:[%s544_s2] sm:$0xff]  ;;  %v23_v1 = vld [vmem:[%s544_s2 + $0x8] sm:$0xff]  ;;  %v195_v11 = vld [vmem:[%s547_s4 + $0x10] sm:$0xff] }
   0x2   :  { %v20_v2 = vld [vmem:[%s545_s0] sm:$0xff]  ;;  %v430_v3 = vpack.c.bf16 %v23_v1, %v22_v0  ;;  %v21_v5 = vld [vmem:[%s545_s0 + $0x8] sm:$0xff]  ;;  %v196_v12 = vld [vmem:[%s547_s4 + $0x18] sm:$0xff] }
   0x3   :  { %398 = vmatprep.mubr.msk.f32.mxu0 %vm24_vm0, %v20_v2  ;;  %v106_v4 = vld [vmem:[%s546_s1] sm:$0xff]  ;;  %v194_v7 = vld [vmem:[%s547_s4 + $0x8] sm:$0xff]  ;;  %v191_v15 = vld [vmem:[%s548_s3 + $0x10] sm:$0xff]  ;;  %v442_v17 = vpack.c.bf16 %v196_v12, %v195_v11 }
   0x4   :  { %405 = vmatprep.mubr.msk.f32.mxu1 %vm24_vm0, %v106_v4  ;;  %v193_v6 = vld [vmem:[%s547_s4] sm:$0xff]  ;;  %431 = vmatprep.subr.bf16.mxu0 %v430_v3  ;;  %v190_v10 = vld [vmem:[%s548_s3 + $0x8] sm:$0xff]  ;;  %v192_v16 = vld [vmem:[%s548_s3 + $0x18] sm:$0xff] }
   0x5   :  { %v189_v8 = vld [vmem:[%s548_s3] sm:$0xff]  ;;  %435 = vmatprep.subr.bf16.mxu1 %v430_v3  ;;  %v438_v9 = vpack.c.bf16 %v194_v7, %v193_v6  ;;  %433 = vmatpush3.bf16.msra.mxu0 %v430_v3  ;;  %v107_v13 = vld [vmem:[%s546_s1 + $0x8] sm:$0xff]  ;;  %v450_v18 = vpack.c.bf16 %v192_v16, %v191_v15 }
   0x6   :  { %437 = vmatpush3.bf16.msra.mxu1 %v430_v3  ;;  %v446_v14 = vpack.c.bf16 %v190_v10, %v189_v8 }
   0x7   :  { %439 = vmatprep.subr.bf16.mxu1 %v438_v9 }
   0x8   :  { %447 = vmatprep.subr.bf16.mxu0 %v446_v14  ;;  %399 = vmatmul.mubr.msk.f32.vlgmr.msra.gmra.mrb[0].mxu0 %vm24_vm0, %v21_v5 }
   0x9   :  { %406 = vmatmul.mubr.msk.f32.vlgmr.msra.gmra.mrb[0].mxu1 %vm24_vm0, %v107_v13  ;;  %449 = vmatpush3.bf16.msra.mxu0 %v446_v14 }
   0xa   :  { %441 = vmatpush3.bf16.msra.mxu1 %v438_v9  ;;  %451 = vmatprep.subr.bf16.mxu0 %v450_v18 }
   0xb   :  { %443 = vmatprep.subr.bf16.mxu1 %v442_v17 }
   0xd   :  { %453 = vmatpush3.bf16.msra.mxu0 %v450_v18 }
   0xe   :  { %445 = vmatpush3.bf16.msra.mxu1 %v442_v17 }
  0xdb   :  { %v400_v19 = vpop.f32.mrb[0].mxu0 }
  0xdc   :  { %v407_v20 = vpop.f32.mrb[0].mxu1  ;;  %v97_v21 = vpop.f32.mrb[1].mxu0 }
  0xdd   :  { %v180_v22 = vpop.f32.mrb[1].mxu1  ;;  %427 = vmatprep.mubr.msk.f32.mxu0 %vm197_vm1, %v97_v21 }
  0xde   :  { %416 = vmatprep.mubr.msk.f32.mxu1 %vm197_vm1, %v180_v22  ;;  %428 = vmatmul.mubr.msk.f32.vlgmr.msra.gmra.mrb[2].mxu0 %vm197_vm1, %v400_v19 }
  0xdf   :  { %417 = vmatmul.mubr.msk.f32.vlgmr.msra.gmra.mrb[2].mxu1 %vm197_vm1, %v407_v20 }
 0x1b1   :  { %v429_v24 = vpop.f32.mrb[2].mxu0 }
 0x1b2   :  { %v418_v23 = vpop.f32.mrb[2].mxu1  ;;  %v351_v27 = vpop.f32.mrb[3].mxu0 }
 0x1b3   :  { %v357_v25 = vadd.f32 %v429_v24, %v418_v23  ;;  %v270_v26 = vpop.f32.mrb[3].mxu1 }
 0x1b4   :  { %v352_v28 = vadd.f32 %v351_v27, %v270_v26 }
 0x1b5   :  { %361 = vst.msk [vmem:[%s549_s5 + $0x8] sm:$0xff] %vm197_vm1, %v357_v25 }
 0x1b6   :  { %360 = vst.msk [vmem:[%s549_s5] sm:$0xff] %vm197_vm1, %v352_v28 }

// kernel: model_forward.10
= control target key start
LH: loop header
LB: loop body
LE: loop exit
PB: predicated region body
PF: predicated region fallthrough
CT: control target
= control target key end

     0   :  { %vm45_vm0 = vcmask 261120   ;;  %vm160_vm1 = vcmask 523264   ;;  %s563_s1 = inlined_call_operand.vmem [shape: f32[32,64], index: 1, kind: input, shape index: {}]   ;;  %s564_s0 = inlined_call_operand.vmem [shape: f32[16,32], index: 0, kind: input, shape index: {}]   ;;  %s565_s3 = inlined_call_operand.vmem [shape: f32[64,32], index: 3, kind: input, shape index: {}]   ;;  %s566_s2 = inlined_call_operand.vmem [shape: f32[1,64], index: 2, kind: input, shape index: {}]   ;;  %s567_s4 = inlined_call_operand.vmem [shape: f32[1,32], index: 4, kind: input, shape index: {}]   ;;  %s568_s5 = inlined_call_operand.vmem [shape: f32[1,32], index: 5, kind: input, shape index: {}]   ;;  %s569_s6 = inlined_call_operand.vmem [shape: f32[1,32], index: 6, kind: input, shape index: {}]   ;;  %s570_s7 = inlined_call_operand.vmem [shape: f32[1,32], index: 7, kind: input, shape index: {}]   ;;  %s571_s8 = inlined_call_operand.vmem [shape: f32[1,32], index: 8, kind: input, shape index: {}]   ;;  %s572_s9 = inlined_call_operand.vmem [shape: f32[16,32], index: 9, kind: output, shape index: {}]  }
   0x1   :  { %v34_v0 = vld [vmem:[%s563_s1] sm:$0xff]  ;;  %v35_v1 = vld [vmem:[%s563_s1 + $0x8] sm:$0xff]  ;;  %v36_v2 = vld [vmem:[%s563_s1 + $0x10] sm:$0xff] }
   0x2   :  { %v395_v3 = vpack.c.bf16 %v35_v1, %v34_v0  ;;  %v37_v4 = vld [vmem:[%s563_s1 + $0x18] sm:$0xff]  ;;  %v496_v5 = vld [vmem:[%s564_s0] sm:$0xff]  ;;  %v33_v7 = vld [vmem:[%s564_s0 + $0x8] sm:$0xff] }
   0x3   :  { %v399_v6 = vpack.c.bf16 %v37_v4, %v36_v2  ;;  %373 = vmatprep.mubr.msk.f32.mxu0 %vm45_vm0, %v496_v5  ;;  %v145_v8 = vld [vmem:[%s565_s3] sm:$0xff]  ;;  %v146_v9 = vld [vmem:[%s565_s3 + $0x8] sm:$0xff]  ;;  %v147_v10 = vld [vmem:[%s565_s3 + $0x10] sm:$0xff] }
   0x4   :  { %396 = vmatprep.subr.bf16.mxu0 %v395_v3  ;;  %v403_v11 = vpack.c.bf16 %v146_v9, %v145_v8  ;;  %v148_v12 = vld [vmem:[%s565_s3 + $0x18] sm:$0xff]  ;;  %v149_v14 = vld [vmem:[%s565_s3 + $0x20] sm:$0xff]  ;;  %v150_v15 = vld [vmem:[%s565_s3 + $0x28] sm:$0xff] }
   0x5   :  { %398 = vmatpush3.bf16.msra.mxu0 %v395_v3  ;;  %v407_v13 = vpack.c.bf16 %v148_v12, %v147_v10  ;;  %v411_v16 = vpack.c.bf16 %v150_v15, %v149_v14  ;;  %v151_v17 = vld [vmem:[%s565_s3 + $0x30] sm:$0xff]  ;;  %v152_v18 = vld [vmem:[%s565_s3 + $0x38] sm:$0xff]  ;;  %v339_v20 = vld [vmem:[%s566_s2] ss:$0 sm:$0xff] }
   0x6   :  { %400 = vmatprep.subr.bf16.mxu0 %v399_v6  ;;  %404 = vmatprep.subr.bf16.mxu1 %v403_v11  ;;  %v415_v19 = vpack.c.bf16 %v152_v18, %v151_v17  ;;  %v342_v43 = vld [vmem:[%s567_s4] ss:$0 sm:$0xff] }
   0x7   :  { %406 = vmatpush3.bf16.msra.mxu1 %v403_v11 }
   0x8   :  { %408 = vmatprep.subr.bf16.mxu1 %v407_v13 }
   0x9   :  { %402 = vmatpush3.bf16.msra.mxu0 %v399_v6 }
   0xb   :  { %410 = vmatpush3.bf16.msra.mxu1 %v407_v13 }
   0xc   :  { %374 = vmatmul.mubr.msk.f32.vlgmr.msra.gmra.mrb[0].mxu0 %vm45_vm0, %v33_v7  ;;  %412 = vmatprep.subr.bf16.mxu1 %v411_v16 }
   0xf   :  { %414 = vmatpush3.bf16.msra.mxu1 %v411_v16 }
  0x10   :  { %416 = vmatprep.subr.bf16.mxu1 %v415_v19 }
  0x13   :  { %418 = vmatpush3.bf16.msra.mxu1 %v415_v19 }
  0xdf   :  { %v375_v21 = vpop.f32.mrb[0].mxu0 }
  0xe0   :  { %v124_v22 = vadd.f32 %v375_v21, %v339_v20  ;;  %v118_v23 = vpop.f32.mrb[1].mxu0 }
  0xe1   :  { %v119_v24 = vadd.f32 %v339_v20, %v118_v23 }
  0xe2   :  { %v128_v25 = vmul.f32 %v124_v22, %v124_v22 }
  0xe3   :  { %v127_v26 = vmul.f32 %v119_v24, %v119_v24 }
  0xe4   :  { %v130_v27 = vmul.f32 %v128_v25, %v124_v22 }
  0xe5   :  { %v129_v28 = vmul.f32 %v127_v26, %v119_v24 }
  0xe6   :  { %v132_v29 = vmul.f32 0.044715, %v130_v27 }
  0xe7   :  { %v131_v30 = vmul.f32 0.044715, %v129_v28 }
  0xe8   :  { %v134_v31 = vadd.f32 %v132_v29, %v124_v22 }
  0xe9   :  { %v133_v32 = vadd.f32 %v131_v30, %v119_v24 }
  0xea   :  { %v136_v33 = vmul.f32 0.7978846, %v134_v31 }
  0xeb   :  { %v135_v34 = vmul.f32 0.7978846, %v133_v32 }
  0xec   :  { %419 = vtanh.f32 %v136_v33  ;;  %v347_v33 = vld [vmem:[%s570_s7] ss:$0 sm:$0xff] }
  0xed   :  { %421 = vtanh.f32 %v135_v34 }
  0xf6   :  { %v420_v35 = vpop.eup %419 }
  0xf7   :  { %v422_v36 = vpop.eup %421  ;;  %v140_v37 = vadd.f32 1.0, %v420_v35  ;;  %v348_v35 = vld [vmem:[%s571_s8] ss:$0 sm:$0xff] }
  0xf8   :  { %v139_v38 = vadd.f32 1.0, %v422_v36 }
  0xf9   :  { %v142_v39 = vmul.f32 0.5, %v140_v37 }
  0xfa   :  { %v141_v40 = vmul.f32 0.5, %v139_v38 }
  0xfb   :  { %v144_v42 = vmul.f32 %v142_v39, %v124_v22 }
  0xfc   :  { %v143_v41 = vmul.f32 %v141_v40, %v119_v24 }
  0xfe   :  { %392 = vmatprep.mubr.msk.f32.mxu1 %vm160_vm1, %v143_v41 }
  0xff   :  { %393 = vmatmul.mubr.msk.f32.vlgmr.msra.gmra.mrb[0].mxu1 %vm160_vm1, %v144_v42 }
 0x1d2   :  { %v394_v44 = vpop.f32.mrb[0].mxu1 }
 0x1d3   :  { %v233_v45 = vpop.f32.mrb[1].mxu1  ;;  %v239_v46 = vadd.f32 %v394_v44, %v342_v43 }
 0x1d4   :  { %v234_v47 = vadd.f32 %v342_v43, %v233_v45 }
 0x1d5   :  { %v243_v50 = vadd.f32 %v239_v46, %v33_v7  ;;  %v346_v7 = vld [vmem:[%s569_s6] ss:$0 sm:$0xff] }
 0x1d6   :  { %v242_v48 = vadd.f32 %v234_v47, %v496_v5  ;;  %v345_v5 = vld [vmem:[%s568_s5] ss:$0 sm:$0xff] }
 0x1d7   :  { %v249_v51 = vsel %vm45_vm0, %v243_v50, 0.0 }
 0x1d8   :  { %v246_v49 = vsel %vm45_vm0, %v242_v48, 0.0 }
 0x1d9   :  { %247 = vadd.xlane.f32.xlu0 %v246_v49 }
 0x1dd   :  { %250 = vadd.xlane.f32.xlu0 %v249_v51 }
 0x266   :  { %v248_v52 = vpop.xlane.xlu0 %247 }
 0x267   :  { %v253_v53 = vmul.f32 0.03125, %v248_v52 }
 0x269   :  { %v255_v54 = vsub.f32 %v242_v48, %v253_v53 }
 0x26a   :  { %v251_v55 = vpop.xlane.xlu0 %250 }
 0x26b   :  { %v254_v56 = vmul.f32 0.03125, %v251_v55  ;;  %v257_v57 = vmul.f32 %v255_v54, %v255_v54 }
 0x26d   :  { %v256_v58 = vsub.f32 %v243_v50, %v254_v56  ;;  %v259_v59 = vsel %vm45_vm0, %v257_v57, 0.0 }
 0x26e   :  { %260 = vadd.xlane.f32.xlu1 %v259_v59 }
 0x26f   :  { %v258_v60 = vmul.f32 %v256_v58, %v256_v58 }
 0x271   :  { %v262_v61 = vsel %vm45_vm0, %v258_v60, 0.0 }
 0x272   :  { %263 = vadd.xlane.f32.xlu1 %v262_v61 }
 0x2fb   :  { %v261_v62 = vpop.xlane.xlu1 %260 }
 0x2fc   :  { %v265_v63 = vmul.f32 0.03125, %v261_v62 }
 0x2fe   :  { %v267_v0 = vadd.f32 1e-05, %v265_v63 }
 0x2ff   :  { %v264_v1 = vpop.xlane.xlu1 %263 }
 0x300   :  { %423 = vrsqrt.f32 %v267_v0  ;;  %v266_v2 = vmul.f32 0.03125, %v264_v1 }
 0x302   :  { %v268_v3 = vadd.f32 1e-05, %v266_v2 }
 0x304   :  { %425 = vrsqrt.f32 %v268_v3 }
 0x30a   :  { %v424_v4 = vpop.eup %423 }
 0x30b   :  { %v271_v6 = vmul.f32 %v424_v4, %v255_v54 }
 0x30d   :  { %v279_v8 = vmul.f32 %v345_v5, %v271_v6 }
 0x30e   :  { %v426_v9 = vpop.eup %425 }
 0x30f   :  { %v287_v10 = vadd.f32 %v346_v7, %v279_v8  ;;  %v272_v11 = vmul.f32 %v426_v9, %v256_v58 }
 0x311   :  { %v291_v12 = vsel %vm45_vm0, %v287_v10, 0.0  ;;  %v280_v13 = vmul.f32 %v345_v5, %v272_v11 }
 0x312   :  { %292 = vadd.xlane.f32.xlu0 %v291_v12 }
 0x313   :  { %v288_v14 = vadd.f32 %v346_v7, %v280_v13 }
 0x315   :  { %v294_v15 = vsel %vm45_vm0, %v288_v14, 0.0 }
 0x316   :  { %295 = vadd.xlane.f32.xlu1 %v294_v15 }
 0x39f   :  { %v293_v16 = vpop.xlane.xlu0 %292 }
 0x3a0   :  { %v297_v17 = vmul.f32 0.03125, %v293_v16 }
 0x3a2   :  { %v299_v18 = vsub.f32 %v287_v10, %v297_v17 }
 0x3a3   :  { %v296_v19 = vpop.xlane.xlu1 %295 }
 0x3a4   :  { %v298_v20 = vmul.f32 0.03125, %v296_v19  ;;  %v301_v21 = vmul.f32 %v299_v18, %v299_v18 }
 0x3a6   :  { %v300_v22 = vsub.f32 %v288_v14, %v298_v20  ;;  %v303_v23 = vsel %vm45_vm0, %v301_v21, 0.0 }
 0x3a7   :  { %304 = vadd.xlane.f32.xlu0 %v303_v23 }
 0x3a8   :  { %v302_v24 = vmul.f32 %v300_v22, %v300_v22 }
 0x3aa   :  { %v306_v25 = vsel %vm45_vm0, %v302_v24, 0.0 }
 0x3ab   :  { %307 = vadd.xlane.f32.xlu1 %v306_v25 }
 0x434   :  { %v305_v26 = vpop.xlane.xlu0 %304 }
 0x435   :  { %v309_v27 = vmul.f32 0.03125, %v305_v26 }
 0x437   :  { %v311_v28 = vadd.f32 1e-05, %v309_v27 }
 0x438   :  { %v308_v29 = vpop.xlane.xlu1 %307 }
 0x439   :  { %427 = vrsqrt.f32 %v311_v28  ;;  %v310_v30 = vmul.f32 0.03125, %v308_v29 }
 0x43b   :  { %v312_v31 = vadd.f32 1e-05, %v310_v30 }
 0x43d   :  { %429 = vrsqrt.f32 %v312_v31 }
 0x443   :  { %v428_v32 = vpop.eup %427 }
 0x444   :  { %v315_v34 = vmul.f32 %v428_v32, %v299_v18 }
 0x446   :  { %v323_v36 = vmul.f32 %v347_v33, %v315_v34 }
 0x447   :  { %v430_v37 = vpop.eup %429 }
 0x448   :  { %v331_v38 = vadd.f32 %v348_v35, %v323_v36  ;;  %v316_v39 = vmul.f32 %v430_v37, %v300_v22 }
 0x44a   :  { %333 = vst.msk [vmem:[%s572_s9] sm:$0xff] %vm45_vm0, %v331_v38  ;;  %v324_v40 = vmul.f32 %v347_v33, %v316_v39 }
 0x44c   :  { %v332_v41 = vadd.f32 %v348_v35, %v324_v40 }
 0x44e   :  { %334 = vst.msk [vmem:[%s572_s9 + $0x8] sm:$0xff] %vm45_vm0, %v332_v41 }

// kernel: model_forward.15
= control target key start
LH: loop header
LB: loop body
LE: loop exit
PB: predicated region body
PF: predicated region fallthrough
CT: control target
= control target key end

     0   :  { %vm28_vm0 = vcmask 261120   ;;  %vm281_vm1 = vcmask 31744   ;;  %s596_s1 = inlined_call_operand.vmem [shape: f32[32,32], index: 1, kind: input, shape index: {}]   ;;  %s597_s2 = inlined_call_operand.vmem [shape: f32[32,32], index: 2, kind: input, shape index: {}]   ;;  %s598_s0 = inlined_call_operand.vmem [shape: f32[16,32], index: 0, kind: input, shape index: {}]   ;;  %s599_s3 = inlined_call_operand.vmem [shape: f32[32,4], index: 3, kind: input, shape index: {}]   ;;  %s600_s4 = inlined_call_operand.vmem [shape: f32[1,4], index: 4, kind: input, shape index: {}]   ;;  %s601_s5 = inlined_call_operand.vmem [shape: f32[16,4], index: 5, kind: output, shape index: {0}]   ;;  %s602_s6 = inlined_call_operand.vmem [shape: f32[16,4], index: 6, kind: output, shape index: {1}]  }
   0x1   :  { %v24_v0 = vld [vmem:[%s596_s1] sm:$0xff]  ;;  %v25_v1 = vld [vmem:[%s596_s1 + $0x8] sm:$0xff]  ;;  %v26_v5 = vld [vmem:[%s596_s1 + $0x10] sm:$0xff] }
   0x2   :  { %v110_v2 = vld [vmem:[%s597_s2] sm:$0xff]  ;;  %v464_v3 = vpack.c.bf16 %v25_v1, %v24_v0  ;;  %v111_v4 = vld [vmem:[%s597_s2 + $0x8] sm:$0xff]  ;;  %v27_v6 = vld [vmem:[%s596_s1 + $0x18] sm:$0xff] }
   0x3   :  { %v472_v7 = vpack.c.bf16 %v111_v4, %v110_v2  ;;  %v468_v8 = vpack.c.bf16 %v27_v6, %v26_v5  ;;  %v112_v9 = vld [vmem:[%s597_s2 + $0x10] sm:$0xff]  ;;  %v113_v10 = vld [vmem:[%s597_s2 + $0x18] sm:$0xff]  ;;  %v22_v11 = vld [vmem:[%s598_s0] sm:$0xff] }
   0x4   :  { %465 = vmatprep.subr.bf16.mxu0 %v464_v3  ;;  %v476_v12 = vpack.c.bf16 %v113_v10, %v112_v9  ;;  %428 = vmatprep.mubr.msk.f32.mxu0 %vm28_vm0, %v22_v11  ;;  %v189_v13 = vld [vmem:[%s599_s3] sm:$0xff]  ;;  %v190_v14 = vld [vmem:[%s599_s3 + $0x8] sm:$0xff]  ;;  %v191_v16 = vld [vmem:[%s599_s3 + $0x10] sm:$0xff] }
   0x5   :  { %473 = vmatprep.subr.bf16.mxu1 %v472_v7  ;;  %467 = vmatpush3.bf16.msra.mxu0 %v464_v3  ;;  %v480_v15 = vpack.c.bf16 %v190_v14, %v189_v13  ;;  %v192_v17 = vld [vmem:[%s599_s3 + $0x18] sm:$0xff]  ;;  %v23_v18 = vld [vmem:[%s598_s0 + $0x8] sm:$0xff]  ;;  %v390_v24 = vld [vmem:[%s600_s4] ss:$0 sm:$0xff] }
   0x6   :  { %475 = vmatpush3.bf16.msra.mxu1 %v472_v7  ;;  %469 = vmatprep.subr.bf16.mxu0 %v468_v8  ;;  %v484_v19 = vpack.c.bf16 %v192_v17, %v191_v16 }
   0x7   :  { %477 = vmatprep.subr.bf16.mxu1 %v476_v12  ;;  %439 = vmatprep.mubr.msk.f32.mxu1 %vm28_vm0, %v22_v11 }
   0x9   :  { %471 = vmatpush3.bf16.msra.mxu0 %v468_v8 }
   0xa   :  { %479 = vmatpush3.bf16.msra.mxu1 %v476_v12  ;;  %481 = vmatprep.subr.bf16.mxu0 %v480_v15 }
   0xb   :  { %489 = vmatprep.subr.bf16.mxu1 %v480_v15 }
   0xc   :  { %429 = vmatmul.mubr.msk.f32.vlgmr.msra.gmra.mrb[0].mxu0 %vm28_vm0, %v23_v18 }
   0xd   :  { %440 = vmatmul.mubr.msk.f32.vlgmr.msra.gmra.mrb[0].mxu1 %vm28_vm0, %v23_v18  ;;  %483 = vmatpush3.bf16.msra.mxu0 %v480_v15 }
   0xe   :  { %491 = vmatpush3.bf16.msra.mxu1 %v480_v15  ;;  %485 = vmatprep.subr.bf16.mxu0 %v484_v19 }
   0xf   :  { %493 = vmatprep.subr.bf16.mxu1 %v484_v19 }
  0x11   :  { %487 = vmatpush3.bf16.msra.mxu0 %v484_v19 }
  0x12   :  { %495 = vmatpush3.bf16.msra.mxu1 %v484_v19 }
  0xdf   :  { %v430_v20 = vpop.f32.mrb[0].mxu0 }
  0xe0   :  { %v441_v21 = vpop.f32.mrb[0].mxu1  ;;  %v101_v22 = vpop.f32.mrb[1].mxu0 }
  0xe1   :  { %v180_v23 = vpop.f32.mrb[1].mxu1  ;;  %450 = vmatprep.mubr.msk.f32.mxu0 %vm28_vm0, %v101_v22 }
  0xe2   :  { %461 = vmatprep.mubr.msk.f32.mxu1 %vm28_vm0, %v180_v23  ;;  %451 = vmatmul.mubr.msk.f32.vlgmr.msra.gmra.mrb[2].mxu0 %vm28_vm0, %v430_v20 }
  0xe3   :  { %462 = vmatmul.mubr.msk.f32.vlgmr.msra.gmra.mrb[2].mxu1 %vm28_vm0, %v441_v21 }
 0x1b5   :  { %v452_v25 = vpop.f32.mrb[2].mxu0 }
 0x1b6   :  { %v278_v26 = vadd.f32 %v452_v25, %v390_v24  ;;  %v463_v27 = vpop.f32.mrb[2].mxu1  ;;  %v272_v28 = vpop.f32.mrb[3].mxu0 }
 0x1b7   :  { %v373_v29 = vadd.f32 %v463_v27, %v390_v24  ;;  %v273_v30 = vadd.f32 %v390_v24, %v272_v28  ;;  %v367_v31 = vpop.f32.mrb[3].mxu1 }
 0x1b8   :  { %283 = vst.msk [vmem:[%s601_s5 + $0x8] sm:$0xff] %vm281_vm1, %v278_v26  ;;  %v368_v32 = vadd.f32 %v390_v24, %v367_v31 }
 0x1b9   :  { %377 = vst.msk [vmem:[%s602_s6 + $0x8] sm:$0xff] %vm281_vm1, %v373_v29  ;;  %282 = vst.msk [vmem:[%s601_s5] sm:$0xff] %vm281_vm1, %v273_v30 }
 0x1ba   :  { %376 = vst.msk [vmem:[%s602_s6] sm:$0xff] %vm281_vm1, %v368_v32 }

// kernel: model_forward.9
= control target key start
LH: loop header
LB: loop body
LE: loop exit
PB: predicated region body
PF: predicated region fallthrough
CT: control target
= control target key end

     0   :  { %s2034_s21 = smov 0   ;;  %s2219_s0 = inlined_call_operand.vmem [shape: f32[2,8,32], index: 0, kind: input, shape index: {}, may-alias: {0,1}]   ;;  %s2220_s1 = inlined_call_operand.vmem [shape: f32[2,8,32], index: 1, kind: input, shape index: {}, may-alias: {0,1}]   ;;  %s2221_s2 = inlined_call_operand.vmem [shape: f32[32,32], index: 2, kind: input, shape index: {}]   ;;  %s2222_s3 = inlined_call_operand.vmem [shape: f32[1,32], index: 3, kind: input, shape index: {}]   ;;  %s2223_s4 = inlined_call_operand.vmem [shape: f32[32,32], index: 4, kind: input, shape index: {}]   ;;  %s2224_s5 = inlined_call_operand.vmem [shape: f32[1,32], index: 5, kind: input, shape index: {}]   ;;  %s2225_s6 = inlined_call_operand.vmem [shape: f32[32,32], index: 6, kind: input, shape index: {}]   ;;  %s2226_s7 = inlined_call_operand.vmem [shape: f32[1,32], index: 7, kind: input, shape index: {}]   ;;  %s2227_s8 = inlined_call_operand.vmem [shape: f32[32,32], index: 8, kind: input, shape index: {}]   ;;  %s2228_s9 = inlined_call_operand.vmem [shape: f32[1,32], index: 9, kind: input, shape index: {}]   ;;  %s2229_s10 = inlined_call_operand.vmem [shape: f32[1,32], index: 10, kind: input, shape index: {}]   ;;  %s2230_s11 = inlined_call_operand.vmem [shape: f32[1,32], index: 11, kind: input, shape index: {}]   ;;  %s2231_s12 = inlined_call_operand.vmem [shape: f32[2,8,32], index: 12, kind: output, shape index: {}]  }
   0x1 LB: > { %s1738_s22 = sadd.s32 4294967295, %s1961_s21   ;;  %p1742_p0 = scmp.ge.s32.totalorder %s1961_s21, 1  ;;  %s1961_s21 = sphi %s2034_s21, %s22_s21  }
   0x2   : > { %p370_p1 = scmp.lt.s32.totalorder %s1961_s21, 3 }
   0x4   : > { %p371_p2 = pnand %p1742_p0, %p370_p1 }
   0x5   : > { %v513_v0 = vld [vmem:[%s2223_s4] sm:$0xff] (!%p371_p2)  ;;  %v514_v1 = vld [vmem:[%s2223_s4 + $0x8] sm:$0xff] (!%p371_p2)  ;;  %v1963_v3 = vmov (!%p371_p2), 0.0|0.0   ;;  %v515_v6 = vld [vmem:[%s2223_s4 + $0x10] sm:$0xff] (!%p371_p2)  ;;  %p414_p3 = scmp.lt.s32.totalorder (!%p371_p2), %s1738_s22, 1  ;;  %vm1964_vm0 = vmmov (!%p371_p2), 0  }
   0x6   : > { %374 = sbr.rel (%p371_p2) target bundleno = 2892 (0xb4c), region = 68  ;;  %v428_v2 = vld [vmem:[%s2221_s2] sm:$0xff] (!%p371_p2)  ;;  %1911 = vmatprep.subr.bf16.mxu1 (!%p371_p2), %v1963_v3  ;;  %v1912_v4 = vpack.c.bf16 (!%p371_p2), %v514_v1, %v513_v0  ;;  %1905 = vmatprep.subr.bf16.mxu0 (!%p371_p2), %v1963_v3  ;;  %v429_v5 = vld [vmem:[%s2221_s2 + $0x8] sm:$0xff] (!%p371_p2)  ;;  %v516_v7 = vld [vmem:[%s2223_s4 + $0x18] sm:$0xff] (!%p371_p2)  ;;  %v1965_v9 = vmov (!%p371_p2), 0.0   ;;  %vm439_vm1 = vcmask (!%p371_p2), 261120  }
   0x7   : > { %v1906_v8 = vpack.c.bf16 (!%p371_p2), %v429_v5, %v428_v2  ;;  %1831 = vmatprep.mubr.msk.f32.mxu1 (!%p371_p2), %vm1964_vm0, %v1965_v9  ;;  %v430_v10 = vld [vmem:[%s2221_s2 + $0x10] sm:$0xff] (!%p371_p2)  ;;  %v431_v11 = vld [vmem:[%s2221_s2 + $0x18] sm:$0xff] (!%p371_p2)  ;;  %1820 = vmatprep.mubr.msk.f32.mxu0 (!%p371_p2), %vm1964_vm0, %v1965_v9  ;;  %v1915_v12 = vpack.c.bf16 (!%p371_p2), %v516_v7, %v515_v6  ;;  %v597_v16 = vld [vmem:[%s2225_s6] sm:$0xff] (!%p371_p2)  ;;  %vm682_vm2 = vcmask (!%p371_p2), 64512  }
   0x8   : > { %1913 = vmatpush3.bf16.msra.mxu1 (!%p371_p2), %v1912_v4  ;;  %v1909_v13 = vpack.c.bf16 (!%p371_p2), %v431_v11, %v430_v10  ;;  %v598_v17 = vld [vmem:[%s2225_s6 + $0x8] sm:$0xff] (!%p371_p2)  ;;  %v599_v18 = vld [vmem:[%s2225_s6 + $0x10] sm:$0xff] (!%p371_p2)  ;;  %v600_v20 = vld [vmem:[%s2225_s6 + $0x18] sm:$0xff] (!%p371_p2) }
   0x9   : > { %1907 = vmatpush3.bf16.msra.mxu0 (!%p371_p2), %v1906_v8  ;;  %1914 = vmatprep.subr.bf16.mxu1 (!%p371_p2), %v1963_v3  ;;  %v1918_v19 = vpack.c.bf16 (!%p371_p2), %v598_v17, %v597_v16  ;;  %v1921_v21 = vpack.c.bf16 (!%p371_p2), %v600_v20, %v599_v18  ;;  %v1748_v22 = vld [vmem:[%s2224_s5] ss:$0 sm:$0xff] (!%p371_p2)  ;;  %v679_v55 = vld [vmem:[%s2227_s8 + $0x8] sm:$0xff] (!%p371_p2) }
   0xa   : > { %1908 = vmatprep.subr.bf16.mxu0 (!%p371_p2), %v1963_v3  ;;  %v1746_v23 = vld [vmem:[%s2222_s3] ss:$0 sm:$0xff] (!%p371_p2) }
   0xb   : > { %v1750_v30 = vld [vmem:[%s2226_s7] ss:$0 sm:$0xff] (!%p371_p2) }
   0xc   : > { %1916 = vmatpush3.bf16.msra.mxu1 (!%p371_p2), %v1915_v12  ;;  %v678_v60 = vld [vmem:[%s2227_s8] sm:$0xff] (!%p371_p2) }
   0xd   : > { %s2233_s22 = smov (!%p414_p3, %s1738_s22), 1  ;;  %1910 = vmatpush3.bf16.msra.mxu0 %v1909_v13  ;;  %1845 = vmatprep.subr.mxu1 %v1965_v9 }
   0xe   : > { %s2070_s23 = sshll.u32 %s2233_s22, 3  ;;  %1917 = vmatprep.subr.bf16.mxu0 %v1963_v3  ;;  %s1968_s22 = smov 104  }
   0xf   : > { %s421_s26 = scalar_lea.vmem %s2220_s1, %s2070_s23  ;;  %s417_s29 = scalar_lea.vmem %s2219_s0, %s2070_s23 }
  0x10   : > { %v427_v14 = vld [vmem:[%s421_s26] sm:$0xff]  ;;  %s1966_s26 = smov 120   ;;  %s425_s30 = scalar_lea.vmem %s2231_s12, %s2070_s23 }
  0x11   : > { %v2080_v15 = vld [vmem:[%s417_s29] sm:$0xff]  ;;  %1832 = vmatmul.mubr.msk.f32.vlgmr.msra.gmra.mrb[0].mxu1 %vm439_vm1, %v427_v14  ;;  %s1967_s29 = smov 112  }
  0x12   : > { %1821 = vmatmul.mubr.msk.f32.vlgmr.msra.gmra.mrb[0].mxu0 %vm439_vm1, %v2080_v15  ;;  %1847 = vmatprep.mubr.msk.f32.mxu1 %vm1964_vm0, %v1965_v9 }
  0x13   : > { %1842 = vmatprep.mubr.msk.f32.mxu0 %vm1964_vm0, %v1965_v9  ;;  %1919 = vmatpush3.bf16.msra.mxu0 %v1918_v19 }
  0x14   : > { %1920 = vmatprep.subr.bf16.mxu0 %v1963_v3 }
  0x17   : > { %1922 = vmatpush3.bf16.msra.mxu0 %v1921_v21 }
  0x18   : > { %1855 = vmatprep.subr.mxu0 %v1965_v9 }
  0x1a   : > { %1843 = vmatmul.mubr.msk.f32.vlgmr.msra.gmra.mrb[2].mxu0 %vm439_vm1, %v427_v14 }
  0x1b   : > { %1857 = vmatprep.mubr.msk.f32.mxu0 %vm1964_vm0, %v1965_v9 }
  0xe4   : > { %v593_v24 = vpop.f32.mrb[0].mxu1 }
  0xe5   : > { %v594_v25 = vadd.f32 %v1748_v22, %v593_v24  ;;  %v1833_v26 = vpop.f32.mrb[1].mxu1  ;;  %v509_v27 = vpop.f32.mrb[0].mxu0  ;;  %v680_v24 = vld [vmem:[%s2227_s8 + $0x10] sm:$0xff] }
  0xe6   : > { %v2112_v28 = vadd.f32 %v1746_v23, %v509_v27  ;;  %v1822_v29 = vpop.f32.mrb[1].mxu0 }
  0xe7   : > { %845 = vrot.lane.b32.xlu0 %v594_v25, %s1966_s26  ;;  %1846 = vmatpush3.xpose.msk.msra.mxu1 %vm682_vm2, %v594_v25 }
  0xe8   : > { %1850 = vmatprep.subr.mxu1 %v1965_v9 }
  0xea   : > { %1848 = vmatmul.mubr.msk.f32.vlgmr.msra.gmra.mrb[2].mxu1 %vm682_vm2, %v2112_v28 }
  0xeb   : > { %843 = vrot.lane.b32.xlu0 %v2112_v28, %s1966_s26  ;;  %1852 = vmatprep.mubr.msk.f32.mxu1 %vm1964_vm0, %v1965_v9 }
  0xed   : > { %v674_v31 = vpop.f32.mrb[2].mxu0 }
  0xee   : > { %v2126_v32 = vadd.f32 %v1750_v30, %v674_v31  ;;  %v1844_v33 = vpop.f32.mrb[3].mxu0 }
  0xf0   : > { %1851 = vmatpush3.msra.mxu1 %v2126_v32 }
  0xf1   : > { %1860 = vmatprep.subr.mxu1 %v1965_v9 }
 0x159   : > { %v846_v34 = vpop.permute.xlu0 %845 }
 0x15a   : > { %1856 = vmatpush3.xpose.msk.msra.mxu0 %vm682_vm2, %v846_v34 }
 0x15b   : > { %1865 = vmatprep.subr.mxu0 %v1965_v9 }
 0x15d   : > { %v844_v35 = vpop.permute.xlu0 %843 }
 0x15e   : > { %1858 = vmatmul.mubr.msk.f32.vlgmr.msra.gmra.mrb[4].mxu0 %vm682_vm2, %v844_v35 }
 0x15f   : > { %1867 = vmatprep.mubr.msk.f32.mxu0 %vm1964_vm0, %v1965_v9  ;;  %1866 = vmatpush3.msra.mxu0 %v679_v55 }
 0x160   : > { %1875 = vmatprep.subr.mxu0 %v1965_v9 }
 0x1bd   : > { %v755_v36 = vpop.f32.mrb[2].mxu1 }
 0x1be   : > { %v1849_v37 = vpop.f32.mrb[3].mxu1  ;;  %v759_v38 = vsel %vm682_vm2, %v755_v36, -inf }
 0x1bf   : > { %760 = vmax.xlane.f32.xlu1 %v759_v38 }
 0x231   : > { %v917_v39 = vpop.f32.mrb[4].mxu0 }
 0x232   : > { %v1859_v40 = vpop.f32.mrb[5].mxu0  ;;  %v921_v41 = vsel %vm682_vm2, %v917_v39, -inf }
 0x233   : > { %922 = vmax.xlane.f32.xlu1 %v921_v41 }
 0x24c   : > { %v761_v42 = vpop.xlane.xlu1 %760 }
 0x24d   : > { %v762_v43 = vsub.f32 %v755_v36, %v761_v42 }
 0x24f   : > { %v763_v44 = vmul.f32 1.442695, %v762_v43 }
 0x251   : > { %1937 = vpow2.f32 %v763_v44 }
 0x25b   : > { %v1938_v45 = vpop.eup %1937 }
 0x25c   : > { %v765_v46 = vsel %vm682_vm2, %v1938_v45, 0.0 }
 0x25d   : > { %766 = vadd.xlane.f32.xlu0 %v765_v46 }
 0x273   : > { %1244 = vrot.lane.b32.xlu0 %v2126_v32, %s1967_s29 }
 0x277   : > { %1396 = vrot.lane.b32.xlu0 %v594_v25, %s1968_s22 }
 0x2c0   : > { %v923_v47 = vpop.xlane.xlu1 %922 }
 0x2c1   : > { %v924_v48 = vsub.f32 %v917_v39, %v923_v47  ;;  %v1768_v47 = vld [vmem:[%s2228_s9] ss:$0 sm:$0xff] }
 0x2c3   : > { %v925_v49 = vmul.f32 1.442695, %v924_v48 }
 0x2c5   : > { %1939 = vpow2.f32 %v925_v49 }
 0x2cf   : > { %v1940_v50 = vpop.eup %1939 }
 0x2d0   : > { %v927_v51 = vsel %vm682_vm2, %v1940_v50, 0.0 }
 0x2d1   : > { %928 = vadd.xlane.f32.xlu1 %v927_v51 }
 0x2e2   : > { %933 = vrot.lane.b32.xlu1 %v2126_v32, %s1966_s26 }
 0x2e6   : > { %1157 = vrot.lane.b32.xlu1 %v594_v25, %s1967_s29 }
 0x2ea   : > { %v767_v52 = vpop.xlane.xlu0 %766  ;;  %1155 = vrot.lane.b32.xlu1 %v2112_v28, %s1967_s29 }
 0x2eb   : > { %1941 = vrcp.f32 %v767_v52 }
 0x2ee   : > { %v1245_v62 = vpop.permute.xlu0 %1244 }
 0x2f2   : > { %v1397_v19 = vpop.permute.xlu0 %1396 }
 0x2f5   : > { %v1942_v53 = vpop.eup %1941 }
 0x2f6   : > { %v769_v54 = vmul.f32 %v1942_v53, %v1938_v45 }
 0x2f8   : > { %1853 = vmatmul.mubr.msk.f32.vlgmr.msra.gmra.mrb[4].mxu1 %vm682_vm2, %v769_v54 }
 0x2f9   : > { %1862 = vmatprep.mubr.msk.f32.mxu1 %vm1964_vm0, %v1965_v9 }
 0x35e   : > { %v929_v56 = vpop.xlane.xlu1 %928 }
 0x35f   : > { %1943 = vrcp.f32 %v929_v56 }
 0x362   : > { %v934_v57 = vpop.permute.xlu1 %933 }
 0x363   : > { %1861 = vmatpush3.msra.mxu1 %v934_v57 }
 0x364   : > { %1870 = vmatprep.subr.mxu1 %v1965_v9 }
 0x366   : > { %v1158_v0 = vpop.permute.xlu1 %1157 }
 0x369   : > { %v1944_v58 = vpop.eup %1943 }
 0x36a   : > { %v931_v59 = vmul.f32 %v1944_v58, %v1940_v50  ;;  %v1156_v3 = vpop.permute.xlu1 %1155 }
 0x36c   : > { %1863 = vmatmul.mubr.msk.f32.vlgmr.msra.gmra.mrb[6].mxu1 %vm682_vm2, %v931_v59 }
 0x36d   : > { %1871 = vmatpush3.msra.mxu1 %v678_v60  ;;  %1872 = vmatprep.mubr.msk.f32.mxu1 %vm1964_vm0, %v1965_v9 }
 0x36e   : > { %1880 = vmatprep.subr.mxu1 %v1965_v9 }
 0x3cb   : > { %v839_v61 = vpop.f32.mrb[4].mxu1 }
 0x3cc   : > { %v1854_v63 = vpop.f32.mrb[5].mxu1  ;;  %1873 = vmatmul.mubr.msk.f32.vlgmr.msra.gmra.mrb[8].mxu1 %vm682_vm2, %v839_v61  ;;  %v1770_v61 = vld [vmem:[%s2230_s11] ss:$0 sm:$0xff] }
 0x3cd   : > { %1881 = vmatpush3.msra.mxu1 %v1245_v62  ;;  %1882 = vmatprep.mubr.msk.f32.mxu1 %vm1964_vm0, %v1965_v9 }
 0x3ce   : > { %1890 = vmatprep.subr.mxu1 %v1965_v9 }
 0x43f   : > { %v1005_v1 = vpop.f32.mrb[6].mxu1 }
 0x440   : > { %v1864_v2 = vpop.f32.mrb[7].mxu1  ;;  %1868 = vmatmul.mubr.msk.f32.vlgmr.msra.gmra.mrb[6].mxu0 %vm682_vm2, %v1005_v1 }
 0x441   : > { %1876 = vmatpush3.xpose.msk.msra.mxu0 %vm682_vm2, %v1158_v0  ;;  %1877 = vmatprep.mubr.msk.f32.mxu0 %vm1964_vm0, %v1965_v9 }
 0x442   : > { %1885 = vmatprep.subr.mxu0 %v1965_v9 }
 0x444   : > { %1878 = vmatmul.mubr.msk.f32.vlgmr.msra.gmra.mrb[8].mxu0 %vm682_vm2, %v1156_v3 }
 0x445   : > { %1887 = vmatprep.mubr.msk.f32.mxu0 %vm1964_vm0, %v1965_v9  ;;  %1886 = vmatpush3.msra.mxu0 %v680_v24 }
 0x446   : > { %1895 = vmatprep.subr.mxu0 %v1965_v9 }
 0x49f   : > { %v1151_v4 = vpop.f32.mrb[8].mxu1 }
 0x4a0   : > { %v1874_v5 = vpop.f32.mrb[9].mxu1 }
 0x513   : > { %v1078_v6 = vpop.f32.mrb[6].mxu0 }
 0x514   : > { %v1152_v7 = vadd.f32 %v1151_v4, %v1078_v6  ;;  %v1869_v8 = vpop.f32.mrb[7].mxu0 }
 0x517   : > { %v1229_v10 = vpop.f32.mrb[8].mxu0 }
 0x518   : > { %v1879_v11 = vpop.f32.mrb[9].mxu0  ;;  %v1233_v12 = vsel %vm682_vm2, %v1229_v10, -inf }
 0x519   : > { %1234 = vmax.xlane.f32.xlu1 %v1233_v12 }
 0x5a6   : > { %v1235_v13 = vpop.xlane.xlu1 %1234 }
 0x5a7   : > { %v1236_v14 = vsub.f32 %v1229_v10, %v1235_v13 }
 0x5a9   : > { %v1237_v16 = vmul.f32 1.442695, %v1236_v14 }
 0x5ab   : > { %1945 = vpow2.f32 %v1237_v16 }
 0x5b5   : > { %v1946_v17 = vpop.eup %1945 }
 0x5b6   : > { %v1239_v18 = vsel %vm682_vm2, %v1946_v17, 0.0 }
 0x5b7   : > { %1240 = vadd.xlane.f32.xlu0 %v1239_v18 }
 0x5cd   : > { %1394 = vrot.lane.b32.xlu0 %v2112_v28, %s1968_s22 }
 0x644   : > { %v1241_v20 = vpop.xlane.xlu0 %1240 }
 0x645   : > { %1947 = vrcp.f32 %v1241_v20 }
 0x648   : > { %v1395_v23 = vpop.permute.xlu0 %1394 }
 0x64f   : > { %v1948_v21 = vpop.eup %1947 }
 0x650   : > { %v1243_v22 = vmul.f32 %v1948_v21, %v1946_v17 }
 0x652   : > { %1883 = vmatmul.mubr.msk.f32.vlgmr.msra.gmra.mrb[10].mxu1 %vm682_vm2, %v1243_v22 }
 0x653   : > { %1891 = vmatpush3.xpose.msk.msra.mxu1 %vm682_vm2, %v1397_v19  ;;  %1892 = vmatprep.mubr.msk.f32.mxu1 %vm1964_vm0, %v1965_v9 }
 0x654   : > { %1900 = vmatprep.subr.mxu1 %v1965_v9 }
 0x656   : > { %1893 = vmatmul.mubr.msk.f32.vlgmr.msra.gmra.mrb[12].mxu1 %vm682_vm2, %v1395_v23 }
 0x657   : > { %1902 = vmatprep.mubr.msk.f32.mxu1 %vm1964_vm0, %v1965_v9 }
 0x725   : > { %v1316_v25 = vpop.f32.mrb[10].mxu1 }
 0x726   : > { %v1884_v26 = vpop.f32.mrb[11].mxu1  ;;  %1888 = vmatmul.mubr.msk.f32.vlgmr.msra.gmra.mrb[10].mxu0 %vm682_vm2, %v1316_v25 }
 0x727   : > { %1897 = vmatprep.mubr.msk.f32.mxu0 %vm1964_vm0, %v1965_v9  ;;  %v681_v9 = vld [vmem:[%s2227_s8 + $0x18] sm:$0xff] }
 0x728   : > { %1901 = vmatpush3.msra.mxu1 %v681_v9 }
 0x729   : > { %v1468_v27 = vpop.f32.mrb[12].mxu1 }
 0x72a   : > { %v1894_v28 = vpop.f32.mrb[13].mxu1  ;;  %v1472_v29 = vsel %vm682_vm2, %v1468_v27, -inf }
 0x72b   : > { %1473 = vmax.xlane.f32.xlu0 %v1472_v29 }
 0x7b8   : > { %v1474_v30 = vpop.xlane.xlu0 %1473 }
 0x7b9   : > { %v1475_v31 = vsub.f32 %v1468_v27, %v1474_v30 }
 0x7bb   : > { %v1476_v33 = vmul.f32 1.442695, %v1475_v31 }
 0x7bd   : > { %1949 = vpow2.f32 %v1476_v33 }
 0x7c7   : > { %v1950_v34 = vpop.eup %1949 }
 0x7c8   : > { %v1478_v35 = vsel %vm682_vm2, %v1950_v34, 0.0 }
 0x7c9   : > { %1479 = vadd.xlane.f32.xlu1 %v1478_v35 }
 0x7da   : > { %1483 = vrot.lane.b32.xlu1 %v2126_v32, %s1968_s22 }
 0x7f9   : > { %v1389_v36 = vpop.f32.mrb[10].mxu0 }
 0x7fa   : > { %v1393_v37 = vadd.f32 %v1389_v36, %v1152_v7  ;;  %v1889_v38 = vpop.f32.mrb[11].mxu0 }
 0x856   : > { %v1480_v39 = vpop.xlane.xlu1 %1479 }
 0x857   : > { %1951 = vrcp.f32 %v1480_v39 }
 0x85a   : > { %v1484_v40 = vpop.permute.xlu1 %1483 }
 0x85b   : > { %1896 = vmatpush3.msra.mxu0 %v1484_v40 }
 0x861   : > { %v1952_v41 = vpop.eup %1951 }
 0x862   : > { %v1482_v42 = vmul.f32 %v1952_v41, %v1950_v34 }
 0x864   : > { %1898 = vmatmul.mubr.msk.f32.vlgmr.msra.gmra.mrb[12].mxu0 %vm682_vm2, %v1482_v42 }
 0x937   : > { %v1555_v43 = vpop.f32.mrb[12].mxu0 }
 0x938   : > { %v1899_v44 = vpop.f32.mrb[13].mxu0  ;;  %1903 = vmatmul.mubr.msk.f32.vlgmr.msra.gmra.mrb[14].mxu1 %vm682_vm2, %v1555_v43 }
 0xa0b   : > { %v1628_v32 = vpop.f32.mrb[14].mxu1 }
 0xa0c   : > { %v1632_v45 = vadd.f32 %v1628_v32, %v1393_v37  ;;  %v1904_v46 = vpop.f32.mrb[15].mxu1 }
 0xa0e   : > { %v1633_v48 = vadd.f32 %v1632_v45, %v2080_v15  ;;  %v1769_v15 = vld [vmem:[%s2229_s10] ss:$0 sm:$0xff] }
 0xa10   : > { %v1641_v49 = vadd.f32 %v1768_v47, %v1633_v48 }
 0xa12   : > { %v1644_v50 = vsel %vm439_vm1, %v1641_v49, 0.0 }
 0xa13   : > { %1645 = vadd.xlane.f32.xlu1 %v1644_v50 }
 0xaa0   : > { %v1646_v51 = vpop.xlane.xlu1 %1645 }
 0xaa1   : > { %v1648_v52 = vmul.f32 0.03125, %v1646_v51 }
 0xaa3   : > { %v1649_v53 = vsub.f32 %v1641_v49, %v1648_v52 }
 0xaa5   : > { %v1650_v54 = vmul.f32 %v1649_v53, %v1649_v53 }
 0xaa7   : > { %v1651_v55 = vsel %vm439_vm1, %v1650_v54, 0.0 }
 0xaa8   : > { %1652 = vadd.xlane.f32.xlu0 %v1651_v55 }
 0xb35   : > { %v1653_v56 = vpop.xlane.xlu0 %1652 }
 0xb36   : > { %v1654_v57 = vmul.f32 0.03125, %v1653_v56 }
 0xb38   : > { %v1655_v58 = vadd.f32 1e-05, %v1654_v57 }
 0xb3a   : > { %1953 = vrsqrt.f32 %v1655_v58 }
 0xb44   : > { %v1954_v59 = vpop.eup %1953 }
 0xb45   : > { %v1657_v60 = vmul.f32 %v1954_v59, %v1649_v53 }
 0xb47   : > { %v1664_v62 = vmul.f32 %v1769_v15, %v1657_v60 }
 0xb49   : > { %v1671_v63 = vadd.f32 %v1770_v61, %v1664_v62 }
 0xb4b   : > { %1672 = vst.msk [vmem:[%s425_s30] sm:$0xff] %vm439_vm1, %v1671_v63 }
 0xb4c PF: > { %s22_s21 = sadd.s32 1, %s1961_s21  }
 0xb4d   : > { %p19_p4 = scmp.ge.s32.totalorder %s22_s21, 4  }
 0xb4f   :  { %21 = sbr.rel (!%p19_p4) target bundleno = 1 (0x1), region = 101 }

</bundles_post_ra>
